<compile_context>
chip_gen: v7x
topology: tpu7x:2x2x1
jax: 0.10.0
libtpu: 0.0.40
codegen_flags: <defaults>
</compile_context>

<pallas_src>
import jax
import jax.numpy as jnp
import numpy as np
from jax import lax
from jax.experimental import pallas as pl
from jax.experimental.pallas import tpu as pltpu


# ---------------------------- Pallas kernel ----------------------------

def _upsample2x_conv3x3_kernel(x_ref, wp_ref, b_ref, o_ref, xp_ref):
    """Fused nearest-2x upsample + 3x3 conv for one (sample, row-tile) grid step.

    x_ref : (1, H, W, Cin)       bf16  full low-res sample (resident per sample)
    wp_ref: (4, 4*Cin, Cout)     bf16  parity-combined 2x2 weights, p = 2*a + b,
                                       K laid out tap-major: (2r+s)*Cin + ci
    b_ref : (1, Cout)            f32   bias
    o_ref : (1, 4, T0, W, Cout)        output rows [2*t*T0, 2*(t+1)*T0), parity-major
    xp_ref: (T0+2, W+2, Cin)     bf16  scratch: zero-padded low-res slab for this tile
    """
    _, _, T0, W, Cout = o_ref.shape
    Cin = x_ref.shape[3]
    t = pl.program_id(1)
    nt = pl.num_programs(1)
    base = pl.multiple_of(t * T0, T0)

    # ---- build the padded bf16 slab for this tile (boundary-only zeroing) ----
    xp_ref[:, 0:1, :] = jnp.zeros((T0 + 2, 1, Cin), xp_ref.dtype)           # left pad col
    xp_ref[:, W + 1:W + 2, :] = jnp.zeros((T0 + 2, 1, Cin), xp_ref.dtype)   # right pad col
    xp_ref[1:T0 + 1, 1:W + 1, :] = x_ref[0, pl.ds(base, T0), :, :]          # interior rows

    @pl.when(t == 0)
    def _top_zero():
        xp_ref[0:1, 1:W + 1, :] = jnp.zeros((1, W, Cin), xp_ref.dtype)

    @pl.when(t > 0)
    def _top_halo():
        xp_ref[0:1, 1:W + 1, :] = x_ref[0, pl.ds(base - 1, 1), :, :]

    @pl.when(t == nt - 1)
    def _bot_zero():
        xp_ref[T0 + 1:T0 + 2, 1:W + 1, :] = jnp.zeros((1, W, Cin), xp_ref.dtype)

    @pl.when(t < nt - 1)
    def _bot_halo():
        xp_ref[T0 + 1:T0 + 2, 1:W + 1, :] = x_ref[0, pl.ds(base + T0, 1), :, :]

    # 3x3 shifted bf16 views of the padded slab: taps[d][e][i, j, :] = Xpad[d+i, e+j, :].
    taps = [[xp_ref[d:d + T0, e:e + W, :] for e in range(3)] for d in range(3)]

    # Bias broadcast once per tile (hoisted out of the parity loop).
    bias = jnp.broadcast_to(b_ref[...], (T0 * W, Cout))

    tap_order = ((0, 0), (0, 1), (1, 0), (1, 1))
    for pa in range(2):            # output row parity
        for pb in range(2):        # output col parity
            p = 2 * pa + pb
            if Cin >= 128:
                # 4 accumulated K=Cin dots: no (T0, W, 4*Cin) patch materialization.
                acc = bias
                for q, (r, s) in enumerate(tap_order):
                    tap = taps[pa + r][pb + s].reshape(T0 * W, Cin)
                    acc = acc + jnp.dot(tap, wp_ref[p, q * Cin:(q + 1) * Cin, :],
                                        preferred_element_type=jnp.float32)
            else:
                # Small Cin: im2col along channels so the MXU sees one deep K=4*Cin pass.
                patch = jnp.concatenate(
                    [taps[pa + r][pb + s] for r, s in tap_order], axis=-1)
                acc = jnp.dot(patch.reshape(T0 * W, 4 * Cin), wp_ref[p],
                              preferred_element_type=jnp.float32) + bias
            o_ref[0, p, :, :, :] = acc.reshape(T0, W, Cout).astype(o_ref.dtype)


# ---------------------------- weight folding ----------------------------

def _parity_weights(w_oihw):
    """Fold nearest-2x upsampling into the 3x3 conv weights.

    Returns (4, 4*Cin, Cout): for parity p = 2*a + b, a 2x2 kernel (row-major (r, s, ci))
    applied to low-res pixels X[i - 1 + a + r, j - 1 + b + s] gives output O[2i+a, 2j+b].
    """
    Cout, Cin = w_oihw.shape[0], w_oihw.shape[1]
    wt = jnp.transpose(w_oihw, (2, 3, 1, 0)).astype(jnp.float32)     # (ky, kx, Cin, Cout)
    rowmix = [jnp.stack([wt[0], wt[1] + wt[2]], axis=0),             # a=0 -> rows (i-1, i)
              jnp.stack([wt[0] + wt[1], wt[2]], axis=0)]             # a=1 -> rows (i, i+1)

    def colmix(m, b):
        if b == 0:                                                   # cols (j-1, j)
            return jnp.stack([m[:, 0], m[:, 1] + m[:, 2]], axis=1)
        return jnp.stack([m[:, 0] + m[:, 1], m[:, 2]], axis=1)       # cols (j, j+1)

    ks = [colmix(rowmix[a], b).reshape(4 * Cin, Cout)
          for a in range(2) for b in range(2)]
    return jnp.stack(ks, axis=0)


# ---------------------------- tiling helpers ----------------------------

def _largest_divisor_leq(n, cap):
    cap = max(1, min(int(cap), n))
    for d in range(cap, 0, -1):
        if n % d == 0:
            return d
    return 1


def _auto_tile_h(H, W, Cin, Cout, out_bytes, budget_bytes=8 << 20):
    """Largest divisor of H whose tile-dependent VMEM (2x out tile + slab) fits budget."""
    best = 1
    for d in range(1, H + 1):
        if H % d:
            continue
        need = 2 * 4 * d * W * Cout * out_bytes + (d + 2) * (W + 2) * Cin * 2
        if need <= budget_bytes:
            best = d
    return best


# ---------------------------- wrapper ----------------------------

def upblock_forward(params, x_nchw, *, tile_h=None, out_dtype=jnp.float32,
                    vmem_limit_bytes=64 * 1024 * 1024):
    """UpBlock.forward: nearest 2x upsample + Conv3x3(pad=1).  NCHW in / NCHW out."""
    w, b = params["conv_w"], params["conv_b"]
    N, Cin, H, W = x_nchw.shape
    Cout = w.shape[0]
    out_bytes = jnp.dtype(out_dtype).itemsize

    if tile_h is None:
        T0 = _auto_tile_h(H, W, Cin, Cout, out_bytes)
    else:
        T0 = _largest_divisor_leq(H, tile_h)
    num_row_tiles = H // T0

    x_nhwc = jnp.transpose(x_nchw, (0, 2, 3, 1)).astype(jnp.bfloat16)  # bf16 MXU operand
    wp = _parity_weights(w).astype(jnp.bfloat16)                        # (4, 4*Cin, Cout)
    bias = b.reshape(1, Cout).astype(jnp.float32)

    out_p = pl.pallas_call(
        _upsample2x_conv3x3_kernel,
        out_shape=jax.ShapeDtypeStruct((N, 4, H, W, Cout), out_dtype),
        grid=(N, num_row_tiles),
        in_specs=[
            # Full low-res sample resident per sample; block index constant across t so
            # it is fetched once per sample per core.  (For very large H*W*Cin on v7x,
            # switch this to memory_space=pl.ANY + manual (T0+2)-row halo DMAs.)
            pl.BlockSpec((1, H, W, Cin), lambda n, t: (n, 0, 0, 0)),
            pl.BlockSpec((4, 4 * Cin, Cout), lambda n, t: (0, 0, 0)),
            pl.BlockSpec((1, Cout), lambda n, t: (0, 0)),
        ],
        out_specs=pl.BlockSpec((1, 4, T0, W, Cout), lambda n, t: (n, 0, t, 0, 0)),
        scratch_shapes=[pltpu.VMEM((T0 + 2, W + 2, Cin), jnp.bfloat16)],
        compiler_params=pltpu.CompilerParams(
            # No carried state across tiles -> both axes are truly parallel (v7x megacore
            # can split row tiles even when N == 1).
            dimension_semantics=("parallel", "parallel"),
            vmem_limit_bytes=vmem_limit_bytes),
        cost_estimate=pl.CostEstimate(
            flops=2 * N * H * W * 4 * (4 * Cin) * Cout,
            transcendentals=0,
            bytes_accessed=(x_nhwc.size * 2 + wp.size * 2 + bias.size * 4
                            + N * 4 * H * W * Cout * out_bytes)),
    )(x_nhwc, wp, bias)

    # (N, [a,b], H, W, C) -> NCHW (N, C, 2H, 2W).  Consumers that accept the parity-major
    # NHWC-like layout can use out_p directly and skip this HBM round trip.
    out6 = out_p.reshape(N, 2, 2, H, W, Cout)
    return jnp.transpose(out6, (0, 5, 3, 1, 4, 2)).reshape(N, Cout, 2 * H, 2 * W)


# ---------------------------- reference (pure JAX, NCHW like PyTorch) ----------------------------

def ref_forward(params, x_nchw):
    up = jnp.repeat(jnp.repeat(x_nchw, 2, axis=2), 2, axis=3)        # nearest, scale 2
    y = lax.conv_general_dilated(
        up, params["conv_w"], window_strides=(1, 1), padding=((1, 1), (1, 1)),
        dimension_numbers=("NCHW", "OIHW", "NCHW"))
    return y + params["conv_b"][None, :, None, None]


# ---------------------------- deterministic parameter init ----------------------------

def init_params(key, channels):
    k1, k2 = jax.random.split(key)
    return {
        "conv_w": 0.1 * jax.random.normal(k1, (channels, channels, 3, 3), jnp.float32),
        "conv_b": 0.1 * jax.random.normal(k2, (channels,), jnp.float32),
    }


if __name__ == "__main__":
    N, C, H, W = 2, 4, 16, 16
    key = jax.random.PRNGKey(0)
    kx, kp = jax.random.split(key)
    x = jax.random.normal(kx, (N, C, H, W), jnp.float32)             # NCHW, like PyTorch
    params = init_params(kp, C)

    # tile_h=8 -> 2 row tiles per sample, exercising the interior-halo and boundary paths.
    out = jax.block_until_ready(upblock_forward(params, x, tile_h=8))
    ref = jax.block_until_ready(ref_forward(params, x))

    assert out.shape == (N, C, 2 * H, 2 * W)
    # bf16 MXU operands with f32 accumulation -> slightly looser tolerance than pure f32.
    np.testing.assert_allclose(np.asarray(out), np.asarray(ref), atol=3e-2, rtol=1e-2)
    print("KERNEL_OK")
</pallas_src>

<mosaic_0001>
module attributes {stable_mosaic.version = 11 : i64} {
  func.func @_upsample2x_conv3x3_kernel(%arg0: i32, %arg1: i32, %arg2: memref<1x16x16x4xbf16, #tpu.memory_space<vmem>>, %arg3: memref<4x16x4xbf16, #tpu.memory_space<vmem>>, %arg4: memref<1x4xf32, #tpu.memory_space<vmem>>, %arg5: memref<1x4x8x16x4xf32, #tpu.memory_space<vmem>>, %arg6: memref<10x18x4xbf16, #tpu.memory_space<vmem>>) attributes {dimension_semantics = [#tpu.dimension_semantics<parallel>, #tpu.dimension_semantics<parallel>], iteration_bounds = array<i64: 2, 2>, scalar_prefetch = 0 : i64, scratch_operands = 1 : i64, tpu.core_type = #tpu.core_type<tc>, window_params = [{transform_indices = @transform_0, window_bounds = array<i64: 1, 16, 16, 4>}, {pipeline_mode = #tpu.pipeline_mode<synchronous>, transform_indices = @transform_1, window_bounds = array<i64: 4, 16, 4>}, {pipeline_mode = #tpu.pipeline_mode<synchronous>, transform_indices = @transform_2, window_bounds = array<i64: 1, 4>}, {transform_indices = @transform_3, window_bounds = array<i64: 1, 4, 8, 16, 4>}]} {
    %c8_i32 = arith.constant 8 : i32
    %0 = arith.muli %arg1, %c8_i32 : i32
    %1 = tpu.assume_multiple %0, 8 : i32
    %cst = arith.constant 0.000000e+00 : bf16
    %2 = vector.broadcast %cst : bf16 to vector<10x1x4xbf16>
    %c0 = arith.constant 0 : index
    %c0_0 = arith.constant 0 : index
    %c0_1 = arith.constant 0 : index
    %3 = vector.load %arg6[%c0, %c0_0, %c0_1] : memref<10x18x4xbf16, #tpu.memory_space<vmem>>, vector<10x1x4xbf16>
    tpu.vector_store %arg6[%c0, %c0_0, %c0_1], %2 {strides = array<i32>} : memref<10x18x4xbf16, #tpu.memory_space<vmem>>, vector<10x1x4xbf16>,
    %cst_2 = arith.constant 0.000000e+00 : bf16
    %4 = vector.broadcast %cst_2 : bf16 to vector<10x1x4xbf16>
    %c0_3 = arith.constant 0 : index
    %c17 = arith.constant 17 : index
    %c0_4 = arith.constant 0 : index
    %5 = vector.load %arg6[%c0_3, %c17, %c0_4] : memref<10x18x4xbf16, #tpu.memory_space<vmem>>, vector<10x1x4xbf16>
    tpu.vector_store %arg6[%c0_3, %c17, %c0_4], %4 {strides = array<i32>} : memref<10x18x4xbf16, #tpu.memory_space<vmem>>, vector<10x1x4xbf16>,
    %c0_5 = arith.constant 0 : index
    %6 = arith.index_cast %1 : i32 to index
    %c0_6 = arith.constant 0 : index
    %c0_7 = arith.constant 0 : index
    %7 = vector.load %arg2[%c0_5, %6, %c0_6, %c0_7] : memref<1x16x16x4xbf16, #tpu.memory_space<vmem>>, vector<1x8x16x4xbf16>
    %8 = vector.shape_cast %7 : vector<1x8x16x4xbf16> to vector<8x16x4xbf16>
    %c1 = arith.constant 1 : index
    %c1_8 = arith.constant 1 : index
    %c0_9 = arith.constant 0 : index
    %9 = vector.load %arg6[%c1, %c1_8, %c0_9] : memref<10x18x4xbf16, #tpu.memory_space<vmem>>, vector<8x16x4xbf16>
    tpu.vector_store %arg6[%c1, %c1_8, %c0_9], %8 {strides = array<i32>} : memref<10x18x4xbf16, #tpu.memory_space<vmem>>, vector<8x16x4xbf16>,
    %c0_i32 = arith.constant 0 : i32
    %10 = arith.cmpi eq, %arg1, %c0_i32 : i32
    %11 = arith.extui %10 : i1 to i32
    %c0_i32_10 = arith.constant 0 : i32
    %12 = arith.cmpi ne, %11, %c0_i32_10 : i32
    scf.if %12 {
      %cst_79 = arith.constant 0.000000e+00 : bf16
      %74 = vector.broadcast %cst_79 : bf16 to vector<1x16x4xbf16>
      %c0_80 = arith.constant 0 : index
      %c1_81 = arith.constant 1 : index
      %c0_82 = arith.constant 0 : index
      %75 = vector.load %arg6[%c0_80, %c1_81, %c0_82] : memref<10x18x4xbf16, #tpu.memory_space<vmem>>, vector<1x16x4xbf16>
      tpu.vector_store %arg6[%c0_80, %c1_81, %c0_82], %74 {strides = array<i32>} : memref<10x18x4xbf16, #tpu.memory_space<vmem>>, vector<1x16x4xbf16>,
    } else {
    }
    %c0_i32_11 = arith.constant 0 : i32
    %13 = arith.cmpi sgt, %arg1, %c0_i32_11 : i32
    %14 = arith.extui %13 : i1 to i32
    %c0_i32_12 = arith.constant 0 : i32
    %15 = arith.cmpi ne, %14, %c0_i32_12 : i32
    scf.if %15 {
      %c1_i32_79 = arith.constant 1 : i32
      %74 = arith.subi %1, %c1_i32_79 : i32
      %c0_80 = arith.constant 0 : index
      %75 = arith.index_cast %74 : i32 to index
      %c0_81 = arith.constant 0 : index
      %c0_82 = arith.constant 0 : index
      %76 = vector.load %arg2[%c0_80, %75, %c0_81, %c0_82] : memref<1x16x16x4xbf16, #tpu.memory_space<vmem>>, vector<1x1x16x4xbf16>
      %77 = vector.shape_cast %76 : vector<1x1x16x4xbf16> to vector<1x16x4xbf16>
      %c0_83 = arith.constant 0 : index
      %c1_84 = arith.constant 1 : index
      %c0_85 = arith.constant 0 : index
      %78 = vector.load %arg6[%c0_83, %c1_84, %c0_85] : memref<10x18x4xbf16, #tpu.memory_space<vmem>>, vector<1x16x4xbf16>
      tpu.vector_store %arg6[%c0_83, %c1_84, %c0_85], %77 {strides = array<i32>} : memref<10x18x4xbf16, #tpu.memory_space<vmem>>, vector<1x16x4xbf16>,
    } else {
    }
    %c1_i32 = arith.constant 1 : i32
    %16 = arith.cmpi eq, %arg1, %c1_i32 : i32
    %17 = arith.extui %16 : i1 to i32
    %c0_i32_13 = arith.constant 0 : i32
    %18 = arith.cmpi ne, %17, %c0_i32_13 : i32
    scf.if %18 {
      %cst_79 = arith.constant 0.000000e+00 : bf16
      %74 = vector.broadcast %cst_79 : bf16 to vector<1x16x4xbf16>
      %c9 = arith.constant 9 : index
      %c1_80 = arith.constant 1 : index
      %c0_81 = arith.constant 0 : index
      %75 = vector.load %arg6[%c9, %c1_80, %c0_81] : memref<10x18x4xbf16, #tpu.memory_space<vmem>>, vector<1x16x4xbf16>
      tpu.vector_store %arg6[%c9, %c1_80, %c0_81], %74 {strides = array<i32>} : memref<10x18x4xbf16, #tpu.memory_space<vmem>>, vector<1x16x4xbf16>,
    } else {
    }
    %c1_i32_14 = arith.constant 1 : i32
    %19 = arith.cmpi slt, %arg1, %c1_i32_14 : i32
    %20 = arith.extui %19 : i1 to i32
    %c0_i32_15 = arith.constant 0 : i32
    %21 = arith.cmpi ne, %20, %c0_i32_15 : i32
    scf.if %21 {
      %c8_i32_79 = arith.constant 8 : i32
      %74 = arith.addi %1, %c8_i32_79 : i32
      %c0_80 = arith.constant 0 : index
      %75 = arith.index_cast %74 : i32 to index
      %c0_81 = arith.constant 0 : index
      %c0_82 = arith.constant 0 : index
      %76 = vector.load %arg2[%c0_80, %75, %c0_81, %c0_82] : memref<1x16x16x4xbf16, #tpu.memory_space<vmem>>, vector<1x1x16x4xbf16>
      %77 = vector.shape_cast %76 : vector<1x1x16x4xbf16> to vector<1x16x4xbf16>
      %c9 = arith.constant 9 : index
      %c1_83 = arith.constant 1 : index
      %c0_84 = arith.constant 0 : index
      %78 = vector.load %arg6[%c9, %c1_83, %c0_84] : memref<10x18x4xbf16, #tpu.memory_space<vmem>>, vector<1x16x4xbf16>
      tpu.vector_store %arg6[%c9, %c1_83, %c0_84], %77 {strides = array<i32>} : memref<10x18x4xbf16, #tpu.memory_space<vmem>>, vector<1x16x4xbf16>,
    } else {
    }
    %c0_16 = arith.constant 0 : index
    %c0_17 = arith.constant 0 : index
    %c0_18 = arith.constant 0 : index
    %22 = vector.load %arg6[%c0_16, %c0_17, %c0_18] : memref<10x18x4xbf16, #tpu.memory_space<vmem>>, vector<8x16x4xbf16>
    %c0_19 = arith.constant 0 : index
    %c1_20 = arith.constant 1 : index
    %c0_21 = arith.constant 0 : index
    %23 = vector.load %arg6[%c0_19, %c1_20, %c0_21] : memref<10x18x4xbf16, #tpu.memory_space<vmem>>, vector<8x16x4xbf16>
    %c0_22 = arith.constant 0 : index
    %c2 = arith.constant 2 : index
    %c0_23 = arith.constant 0 : index
    %24 = vector.load %arg6[%c0_22, %c2, %c0_23] : memref<10x18x4xbf16, #tpu.memory_space<vmem>>, vector<8x16x4xbf16>
    %c1_24 = arith.constant 1 : index
    %c0_25 = arith.constant 0 : index
    %c0_26 = arith.constant 0 : index
    %25 = vector.load %arg6[%c1_24, %c0_25, %c0_26] : memref<10x18x4xbf16, #tpu.memory_space<vmem>>, vector<8x16x4xbf16>
    %c1_27 = arith.constant 1 : index
    %c1_28 = arith.constant 1 : index
    %c0_29 = arith.constant 0 : index
    %26 = vector.load %arg6[%c1_27, %c1_28, %c0_29] : memref<10x18x4xbf16, #tpu.memory_space<vmem>>, vector<8x16x4xbf16>
    %c1_30 = arith.constant 1 : index
    %c2_31 = arith.constant 2 : index
    %c0_32 = arith.constant 0 : index
    %27 = vector.load %arg6[%c1_30, %c2_31, %c0_32] : memref<10x18x4xbf16, #tpu.memory_space<vmem>>, vector<8x16x4xbf16>
    %c2_33 = arith.constant 2 : index
    %c0_34 = arith.constant 0 : index
    %c0_35 = arith.constant 0 : index
    %28 = vector.load %arg6[%c2_33, %c0_34, %c0_35] : memref<10x18x4xbf16, #tpu.memory_space<vmem>>, vector<8x16x4xbf16>
    %c2_36 = arith.constant 2 : index
    %c1_37 = arith.constant 1 : index
    %c0_38 = arith.constant 0 : index
    %29 = vector.load %arg6[%c2_36, %c1_37, %c0_38] : memref<10x18x4xbf16, #tpu.memory_space<vmem>>, vector<8x16x4xbf16>
    %c2_39 = arith.constant 2 : index
    %c2_40 = arith.constant 2 : index
    %c0_41 = arith.constant 0 : index
    %30 = vector.load %arg6[%c2_39, %c2_40, %c0_41] : memref<10x18x4xbf16, #tpu.memory_space<vmem>>, vector<8x16x4xbf16>
    %c0_42 = arith.constant 0 : index
    %c0_43 = arith.constant 0 : index
    %31 = vector.load %arg4[%c0_42, %c0_43] : memref<1x4xf32, #tpu.memory_space<vmem>>, vector<1x4xf32>
    %32 = vector.shape_cast %31 : vector<1x4xf32> to vector<1x4xf32>
    %33 = vector.broadcast %32 : vector<1x4xf32> to vector<128x4xf32>
    %34 = tpu.concatenate %22, %23, %25, %26 in 2 : vector<8x16x4xbf16>, vector<8x16x4xbf16>, vector<8x16x4xbf16>, vector<8x16x4xbf16> -> vector<8x16x16xbf16>
    %35 = vector.shape_cast %34 : vector<8x16x16xbf16> to vector<128x16xbf16>
    %c0_44 = arith.constant 0 : index
    %c0_45 = arith.constant 0 : index
    %c0_46 = arith.constant 0 : index
    %36 = vector.load %arg3[%c0_44, %c0_45, %c0_46] : memref<4x16x4xbf16, #tpu.memory_space<vmem>>, vector<1x16x4xbf16>
    %37 = vector.shape_cast %36 : vector<1x16x4xbf16> to vector<16x4xbf16>
    %cst_47 = arith.constant dense<0.000000e+00> : vector<128x4xf32>
    %38 = tpu.matmul %35, %37, %cst_47 {dimension_numbers = #tpu.dot_dimension_numbers<[1], [0], [0], [1], [0, 0, 1, 1], [], []>} : vector<128x16xbf16>, vector<16x4xbf16>, vector<128x4xf32> -> vector<128x4xf32>
    %39 = arith.addf %38, %33 : vector<128x4xf32>
    %40 = vector.shape_cast %39 : vector<128x4xf32> to vector<8x16x4xf32>
    %c0_48 = arith.constant 0 : index
    %c0_49 = arith.constant 0 : index
    %c0_50 = arith.constant 0 : index
    %c0_51 = arith.constant 0 : index
    %c0_52 = arith.constant 0 : index
    %41 = vector.load %arg5[%c0_48, %c0_49, %c0_50, %c0_51, %c0_52] : memref<1x4x8x16x4xf32, #tpu.memory_space<vmem>>, vector<1x1x8x16x4xf32>
    %42 = vector.shape_cast %41 : vector<1x1x8x16x4xf32> to vector<8x16x4xf32>
    %43 = vector.shape_cast %40 : vector<8x16x4xf32> to vector<1x1x8x16x4xf32>
    tpu.vector_store %arg5[%c0_48, %c0_49, %c0_50, %c0_51, %c0_52], %43 {strides = array<i32>} : memref<1x4x8x16x4xf32, #tpu.memory_space<vmem>>, vector<1x1x8x16x4xf32>,
    %44 = tpu.concatenate %23, %24, %26, %27 in 2 : vector<8x16x4xbf16>, vector<8x16x4xbf16>, vector<8x16x4xbf16>, vector<8x16x4xbf16> -> vector<8x16x16xbf16>
    %45 = vector.shape_cast %44 : vector<8x16x16xbf16> to vector<128x16xbf16>
    %c1_53 = arith.constant 1 : index
    %c0_54 = arith.constant 0 : index
    %c0_55 = arith.constant 0 : index
    %46 = vector.load %arg3[%c1_53, %c0_54, %c0_55] : memref<4x16x4xbf16, #tpu.memory_space<vmem>>, vector<1x16x4xbf16>
    %47 = vector.shape_cast %46 : vector<1x16x4xbf16> to vector<16x4xbf16>
    %cst_56 = arith.constant dense<0.000000e+00> : vector<128x4xf32>
    %48 = tpu.matmul %45, %47, %cst_56 {dimension_numbers = #tpu.dot_dimension_numbers<[1], [0], [0], [1], [0, 0, 1, 1], [], []>} : vector<128x16xbf16>, vector<16x4xbf16>, vector<128x4xf32> -> vector<128x4xf32>
    %49 = arith.addf %48, %33 : vector<128x4xf32>
    %50 = vector.shape_cast %49 : vector<128x4xf32> to vector<8x16x4xf32>
    %c0_57 = arith.constant 0 : index
    %c1_58 = arith.constant 1 : index
    %c0_59 = arith.constant 0 : index
    %c0_60 = arith.constant 0 : index
    %c0_61 = arith.constant 0 : index
    %51 = vector.load %arg5[%c0_57, %c1_58, %c0_59, %c0_60, %c0_61] : memref<1x4x8x16x4xf32, #tpu.memory_space<vmem>>, vector<1x1x8x16x4xf32>
    %52 = vector.shape_cast %51 : vector<1x1x8x16x4xf32> to vector<8x16x4xf32>
    %53 = vector.shape_cast %50 : vector<8x16x4xf32> to vector<1x1x8x16x4xf32>
    tpu.vector_store %arg5[%c0_57, %c1_58, %c0_59, %c0_60, %c0_61], %53 {strides = array<i32>} : memref<1x4x8x16x4xf32, #tpu.memory_space<vmem>>, vector<1x1x8x16x4xf32>,
    %54 = tpu.concatenate %25, %26, %28, %29 in 2 : vector<8x16x4xbf16>, vector<8x16x4xbf16>, vector<8x16x4xbf16>, vector<8x16x4xbf16> -> vector<8x16x16xbf16>
    %55 = vector.shape_cast %54 : vector<8x16x16xbf16> to vector<128x16xbf16>
    %c2_62 = arith.constant 2 : index
    %c0_63 = arith.constant 0 : index
    %c0_64 = arith.constant 0 : index
    %56 = vector.load %arg3[%c2_62, %c0_63, %c0_64] : memref<4x16x4xbf16, #tpu.memory_space<vmem>>, vector<1x16x4xbf16>
    %57 = vector.shape_cast %56 : vector<1x16x4xbf16> to vector<16x4xbf16>
    %cst_65 = arith.constant dense<0.000000e+00> : vector<128x4xf32>
    %58 = tpu.matmul %55, %57, %cst_65 {dimension_numbers = #tpu.dot_dimension_numbers<[1], [0], [0], [1], [0, 0, 1, 1], [], []>} : vector<128x16xbf16>, vector<16x4xbf16>, vector<128x4xf32> -> vector<128x4xf32>
    %59 = arith.addf %58, %33 : vector<128x4xf32>
    %60 = vector.shape_cast %59 : vector<128x4xf32> to vector<8x16x4xf32>
    %c0_66 = arith.constant 0 : index
    %c2_67 = arith.constant 2 : index
    %c0_68 = arith.constant 0 : index
    %c0_69 = arith.constant 0 : index
    %c0_70 = arith.constant 0 : index
    %61 = vector.load %arg5[%c0_66, %c2_67, %c0_68, %c0_69, %c0_70] : memref<1x4x8x16x4xf32, #tpu.memory_space<vmem>>, vector<1x1x8x16x4xf32>
    %62 = vector.shape_cast %61 : vector<1x1x8x16x4xf32> to vector<8x16x4xf32>
    %63 = vector.shape_cast %60 : vector<8x16x4xf32> to vector<1x1x8x16x4xf32>
    tpu.vector_store %arg5[%c0_66, %c2_67, %c0_68, %c0_69, %c0_70], %63 {strides = array<i32>} : memref<1x4x8x16x4xf32, #tpu.memory_space<vmem>>, vector<1x1x8x16x4xf32>,
    %64 = tpu.concatenate %26, %27, %29, %30 in 2 : vector<8x16x4xbf16>, vector<8x16x4xbf16>, vector<8x16x4xbf16>, vector<8x16x4xbf16> -> vector<8x16x16xbf16>
    %65 = vector.shape_cast %64 : vector<8x16x16xbf16> to vector<128x16xbf16>
    %c3 = arith.constant 3 : index
    %c0_71 = arith.constant 0 : index
    %c0_72 = arith.constant 0 : index
    %66 = vector.load %arg3[%c3, %c0_71, %c0_72] : memref<4x16x4xbf16, #tpu.memory_space<vmem>>, vector<1x16x4xbf16>
    %67 = vector.shape_cast %66 : vector<1x16x4xbf16> to vector<16x4xbf16>
    %cst_73 = arith.constant dense<0.000000e+00> : vector<128x4xf32>
    %68 = tpu.matmul %65, %67, %cst_73 {dimension_numbers = #tpu.dot_dimension_numbers<[1], [0], [0], [1], [0, 0, 1, 1], [], []>} : vector<128x16xbf16>, vector<16x4xbf16>, vector<128x4xf32> -> vector<128x4xf32>
    %69 = arith.addf %68, %33 : vector<128x4xf32>
    %70 = vector.shape_cast %69 : vector<128x4xf32> to vector<8x16x4xf32>
    %c0_74 = arith.constant 0 : index
    %c3_75 = arith.constant 3 : index
    %c0_76 = arith.constant 0 : index
    %c0_77 = arith.constant 0 : index
    %c0_78 = arith.constant 0 : index
    %71 = vector.load %arg5[%c0_74, %c3_75, %c0_76, %c0_77, %c0_78] : memref<1x4x8x16x4xf32, #tpu.memory_space<vmem>>, vector<1x1x8x16x4xf32>
    %72 = vector.shape_cast %71 : vector<1x1x8x16x4xf32> to vector<8x16x4xf32>
    %73 = vector.shape_cast %70 : vector<8x16x4xf32> to vector<1x1x8x16x4xf32>
    tpu.vector_store %arg5[%c0_74, %c3_75, %c0_76, %c0_77, %c0_78], %73 {strides = array<i32>} : memref<1x4x8x16x4xf32, #tpu.memory_space<vmem>>, vector<1x1x8x16x4xf32>,
    return
  }
  func.func @transform_0(%arg0: i32, %arg1: i32) -> (i32, i32, i32, i32) {
    %c0_i32 = arith.constant 0 : i32
    %c0_i32_0 = arith.constant 0 : i32
    %c0_i32_1 = arith.constant 0 : i32
    %c0_i32_2 = arith.constant 0 : i32
    return %arg0, %c0_i32, %c0_i32_0, %c0_i32_1 : i32, i32, i32, i32
  }
  func.func @transform_1(%arg0: i32, %arg1: i32) -> (i32, i32, i32) {
    %c0_i32 = arith.constant 0 : i32
    %c0_i32_0 = arith.constant 0 : i32
    %c0_i32_1 = arith.constant 0 : i32
    %c0_i32_2 = arith.constant 0 : i32
    return %c0_i32, %c0_i32_0, %c0_i32_1 : i32, i32, i32
  }
  func.func @transform_2(%arg0: i32, %arg1: i32) -> (i32, i32) {
    %c0_i32 = arith.constant 0 : i32
    %c0_i32_0 = arith.constant 0 : i32
    %c0_i32_1 = arith.constant 0 : i32
    return %c0_i32, %c0_i32_0 : i32, i32
  }
  func.func @transform_3(%arg0: i32, %arg1: i32) -> (i32, i32, i32, i32, i32) {
    %c0_i32 = arith.constant 0 : i32
    %c0_i32_0 = arith.constant 0 : i32
    %c0_i32_1 = arith.constant 0 : i32
    %c0_i32_2 = arith.constant 0 : i32
    return %arg0, %c0_i32, %arg1, %c0_i32_0, %c0_i32_1 : i32, i32, i32, i32, i32
  }
}

</mosaic_0001>

<bundles_post_ra>
// kernel: tpu_custom_call.1
= control target key start
LH: loop header
LB: loop body
LE: loop exit
PB: predicated region body
PF: predicated region fallthrough
CT: control target
= control target key end

     0   :  { %s5271_s0 = inlined_call_operand.hbm [shape: bf16[2,16,16,4], index: 0, kind: input, shape index: {}]   ;;  %s5272_s1 = inlined_call_operand.hbm [shape: bf16[4,16,4], index: 1, kind: input, shape index: {}]   ;;  %s5273_s2 = inlined_call_operand.hbm [shape: f32[1,4], index: 2, kind: input, shape index: {}]   ;;  %s5274_s3 = inlined_call_operand.hbm [shape: f32[2,4,16,16,4], index: 3, kind: output, shape index: {}]  }
   0x1   :  { %5313 = sst [smem:[#allocation30_spill]] %s5272_s1 }
   0x2   :  { %5314 = sst [smem:[#allocation31_spill]] %s5273_s2 }
   0x3   :  { %8 = vsyncpa [#allocation4], 0 }
   0x4   :  { %10 = vsyncpa [#allocation4 + $0x1], 0 }
   0x5   :  { %11 = vsyncpa [#allocation7], 0 }
   0x6   :  { %12 = vsyncpa [#allocation5], 0 }
   0x7   :  { %14 = vsyncpa [#allocation5 + $0x1], 0  ;;  %s3712_s12 = smov 0   ;;  %s3714_s13 = smov 0  }
   0x8   :  { %s3716_s14 = smov 0   ;;  %s3718_s15 = smov 0  }
   0x9   :  { %s3720_s16 = smov 0   ;;  %s3722_s17 = smov 0  }
   0xa   :  { %s3724_s18 = smov 0   ;;  %s3726_s19 = smov 0  }
   0xb   :  { %s3728_s20 = smov 0   ;;  %s3730_s21 = smov 0  }
   0xc   :  { %s3732_s22 = smov 0  }
   0xd LB: > { %5315 = sst [smem:[#allocation15_spill]] %s3633_s12  ;;  %s2956_s23 = sadd.s32 4294967295, %s3673_s22   ;;  %s3673_s22 = sphi %s3732_s22, %s20_s22   ;;  %s3669_s21 = sphi %s3730_s21, %s5387_s21   ;;  %s3665_s20 = sphi %s3728_s20, %s5378_s20   ;;  %s3661_s19 = sphi %s3726_s19, %s5386_s19   ;;  %s3657_s18 = sphi %s3724_s18, %s5377_s18   ;;  %s3653_s17 = sphi %s3722_s17, %s5385_s17   ;;  %s3649_s16 = sphi %s3720_s16, %s5384_s16   ;;  %s3645_s15 = sphi %s3718_s15, %s5383_s15   ;;  %s3641_s14 = sphi %s3716_s14, %s5382_s14   ;;  %s3637_s13 = sphi %s3714_s13, %s5381_s13   ;;  %s3633_s12 = sphi %s3712_s12, %s5380_s12  }
   0xe   : > { %5316 = sst [smem:[#allocation16_spill]] %s3665_s20  ;;  %s2957_s24 = sadd.s32 4294967294, %s3673_s22  }
   0xf   : > { %p52_p0 = scmp.ne.s32.totalorder %s3649_s16, %s3645_s15  ;;  %p3768_p1 = scmp.eq.s32.totalorder %s2956_s23, 0 }
  0x10   : > { %p119_p2 = scmp.ne.s32.totalorder %s3641_s14, %s3637_s13  ;;  %p120_p4 = scmp.eq.s32.totalorder %s2956_s23, 3 }
  0x11   : > { %s5317_s25 = scalar_select %p3768_p1, 1, 0 }
  0x12   : > { %p3777_p3 = por %p3768_p1, %p52_p0  ;;  %p125_p5 = scmp.ne.s32.totalorder %s3637_s13, %s3633_s12 }
  0x13   : > { %p126_p6 = scmp.eq.s32.totalorder %s2957_s24, 3  ;;  %p3783_p7 = por %p120_p4, %p119_p2 }
  0x14   : > { %s5318_s27 = scalar_select %p3777_p3, 1, 0 }
  0x15   : > { %s5319_s28 = scalar_select %p3783_p7, 1, 0 }
  0x16   : > { %p2958_p8 = scmp.ge.s32.totalorder %s3673_s22, 1  ;;  %p3788_p9 = por %p126_p6, %p125_p5 }
  0x17   : > { %p133_p10 = scmp.lt.s32.totalorder %s3673_s22, 5  ;;  %s3675_s4 = smov [#allocation6]  }
  0x18   : > { %s5320_s29 = scalar_select %p3788_p9, 1, 0 }
  0x19   : > { %p3793_p11 = pnand %p2958_p8, %p133_p10  ;;  %s145_s5 = sshll.u32 %s3675_s4, 4  ;;  %s146_s5 = int_to_ptr.vmem [resolvable:$true] %s145_s5 }
  0x1a   : > { %5321 = sst [smem:[#allocation17_spill]] %s5320_s29  ;;  %s3676_s7 = smov [#allocation8]  }
  0x1b   : > { %s5322_s30 = scalar_select %p3793_p11, 1, 0 }
  0x1c   : > { %p3280_p12 = pneg %p3793_p11  ;;  %s159_s8 = sshll.u32 %s3676_s7, 4  ;;  %s3805_s8 = int_to_ptr.vmem [resolvable:$true] %s159_s8 }
  0x1d   : > { %s5324_s1 = sld [smem:[#allocation30_spill]] }
  0x1e   : > { %p3801_p13 = pnand %p3280_p12, %p3768_p1 }
  0x20   : > { %p3491_p2 = pneg %p3801_p13 }
  0x23   : > { %s3489_s11 = scalar_lea.hbm %s5324_s1, 512 }
  0x24   : > { %p3490_p0 = scmp.ne.s32.totalorder %s5324_s1, %s3489_s11  ;;  %p3496_p6 = scmp.lt.u32.totalorder %s3489_s11, %s5324_s1 }
  0x26   : > { %p3492_p4 = pnand %p3491_p2, %p3490_p0 }
  0x28   : > { %p3493_p5 = pneg %p3492_p4 }
  0x2a   : > { %p3498_p8 = pnand %p3496_p6, %p3493_p5 }
  0x2c   : > { %3501 = shalt.err (!%p3498_p8)
}
  0x2d   : > { %s3502_s7 = scalar_lea.vmem %s146_s5, 512  ;;  %p3510_p7 = scmp.lt.s32.totalorder %s146_s5, %s146_s5 }
  0x2e   : > { %p3503_p10 = scmp.ne.s32.totalorder %s146_s5, %s3502_s7  ;;  %p3511_p1 = scmp.lt.s32.totalorder %s3502_s7, %s3502_s7 }
  0x30   : > { %p3505_p12 = pnand %p3503_p10, %p3491_p2  ;;  %p3512_p3 = por %p3511_p1, %p3510_p7 }
  0x32   : > { %p3506_p9 = pneg %p3505_p12 }
  0x34   : > { %p3513_p11 = pnand %p3512_p3, %p3506_p9 }
  0x36   : > { %3516 = shalt.err (!%p3513_p11)
}
  0x37   : > { %s5282_s9 = smov 64   ;;  %s5283_s10 = smov 4  }
  0x38   : > { %3283 = dma.hbm_to_vmem [thread:$0]  (!%p3801_p13), %s5324_s1, 512, %s146_s5, [#allocation7], %s5282_s9, %s5282_s9, %s5283_s10  }
  0x39   : > { %s5325_s2 = sld [smem:[#allocation31_spill]] }
  0x3f   : > { %s3517_s4 = scalar_lea.hbm %s5325_s2, 16 }
  0x40   : > { %p3518_p1 = scmp.ne.s32.totalorder %s5325_s2, %s3517_s4  ;;  %p3524_p9 = scmp.lt.u32.totalorder %s3517_s4, %s5325_s2 }
  0x42   : > { %p3520_p3 = pnand %p3518_p1, %p3491_p2 }
  0x44   : > { %p3521_p7 = pneg %p3520_p3 }
  0x46   : > { %p3526_p11 = pnand %p3524_p9, %p3521_p7 }
  0x48   : > { %3529 = shalt.err (!%p3526_p11)
}
  0x49   : > { %s3530_s5 = scalar_lea.vmem %s3805_s8, 16  ;;  %s3537_s26 = scalar_lea.vmem %s3805_s8, 32 }
  0x4a   : > { %p3531_p0 = scmp.ne.s32.totalorder %s3805_s8, %s3530_s5  ;;  %p3538_p6 = scmp.lt.s32.totalorder %s3805_s8, %s3805_s8 }
  0x4b   : > { %p3539_p8 = scmp.lt.s32.totalorder %s3537_s26, %s3530_s5 }
  0x4c   : > { %p3533_p4 = pnand %p3531_p0, %p3491_p2 }
  0x4d   : > { %p3540_p10 = por %p3539_p8, %p3538_p6 }
  0x4e   : > { %p3534_p5 = pneg %p3533_p4 }
  0x50   : > { %p3541_p12 = pnand %p3540_p10, %p3534_p5 }
  0x52   : > { %3544 = shalt.err (!%p3541_p12)
}
  0x53   : > { %3286 = dma.hbm_to_vmem [thread:$0]  (!%p3801_p13), %s5325_s2, 16, %s3805_s8, [#allocation7]  }
  0x54   : > { %s29_s11 = sadd.s32 1, %s3665_s20  ;;  %s32_s15 = sadd.s32 1, %s3669_s21 }
  0x55   : > { %p30_p2 = scmp.ge.s32.totalorder %s29_s11, 2  ;;  %s39_s6 = sadd.s32 1, %s3653_s17 }
  0x56   : > { %p46_p1 = scmp.ne.s32.totalorder %s3653_s17, %s3649_s16  ;;  %p47_p3 = scmp.eq.s32.totalorder %s3673_s22, 0 }
  0x57   : > { %s5389_s11 = smov (%p30_p2, %s29_s11), 0  ;;  %s5391_s15 = smov (!%p30_p2, %s32_s15), %s3669_s21 }
  0x58   : > { %5326 = sst [smem:[#allocation18_spill]] %s5389_s11  ;;  %p3867_p7 = por %p47_p3, %p46_p1 }
  0x59   : > { %s105_s24 = ssub.s32 %s3665_s20, %s5389_s11  ;;  %p34_p13 = scmp.ge.s32.totalorder %s5391_s15, 2 }
  0x5a   : > { %p3297_p9 = scmp.lt.s32.totalorder %s3673_s22, 4  ;;  %s170_s8 = sand.u32 1, %s3653_s17  }
  0x5b   : > { %s3148_s4 = sshll.u32 %s3669_s21, 11  ;;  %s5393_s15 = smov (%p34_p13, %s5391_s15), 0 }
  0x5c   : > { %s2962_s7 = sshll.u32 %s170_s8, 7  ;;  %s36_s5 = ssub.s32 %s3669_s21, %s5393_s15 }
  0x5d   : > { %p37_p11 = scmp.eq.s32.totalorder %s36_s5, 0  ;;  %s106_s26 = sor.u32 %s105_s24, %s36_s5 }
  0x5e   : > { %p107_p0 = scmp.eq.s32.totalorder %s106_s26, 0  ;;  %s3883_s9 = scalar_lea.hbm %s5271_s0, %s3148_s4 }
  0x5f   : > { %s3886_s10 = scalar_select %p37_p11, %s3653_s17, %s39_s6  }
  0x60   : > { %s5328_s1 = sadd.s32 1, %s3641_s14  ;;  %s174_s11 = scalar_lea.vmem [#allocation3], %s2962_s7 }
  0x61   : > { %s3891_s2 = scalar_select %p107_p0, %s3641_s14, %s5328_s1  }
  0x62   : > { %s181_s20 = sshll.u32 %s174_s11, 4  ;;  %p3897_p4 = pnand %p3297_p9, %p3867_p7  ;;  %s3901_s20 = int_to_ptr.vmem [resolvable:$true] %s181_s20 }
  0x63   : > { %s3903_s4 = scalar_lea.sflag [#allocation4], %s170_s8  ;;  %s3545_s6 = scalar_lea.hbm %s3883_s9, 2048 }
  0x64   : > { %p3546_p5 = scmp.ne.s32.totalorder %s3883_s9, %s3545_s6  ;;  %p3547_p6 = pneg %p3897_p4 }
  0x65   : > { %s3550_s23 = scalar_lea.hbm %s5271_s0, 4096  ;;  %p3551_p12 = scmp.lt.u32.totalorder %s3883_s9, %s5271_s0 }
  0x66   : > { %p3548_p8 = pnand %p3547_p6, %p3546_p5  ;;  %p3552_p2 = scmp.lt.u32.totalorder %s3550_s23, %s3545_s6 }
  0x67   : > { %p3554_p3 = scmp.lt.u32.totalorder %s3545_s6, %s3883_s9 }
  0x68   : > { %p3549_p10 = pneg %p3548_p8  ;;  %p3553_p1 = por %p3552_p2, %p3551_p12 }
  0x6a   : > { %p3555_p7 = por %p3554_p3, %p3553_p1 }
  0x6c   : > { %p3556_p13 = pnand %p3555_p7, %p3549_p10 }
  0x6e   : > { %3559 = shalt.err (!%p3556_p13)
}
  0x6f   : > { %s3560_s8 = scalar_lea.vmem %s3901_s20, 2048  ;;  %s3679_s26 = smov [#allocation3]  }
  0x70   : > { %p3561_p9 = scmp.ne.s32.totalorder %s3901_s20, %s3560_s8  ;;  %s3565_s12 = sshll.u32 %s3679_s26, 4  ;;  %s3566_s12 = int_to_ptr.vmem [resolvable:$false] %s3565_s12 }
  0x71   : > { %s3567_s29 = scalar_lea.vmem %s3566_s12, 4096  ;;  %p3568_p5 = scmp.lt.s32.totalorder %s3901_s20, %s3566_s12 }
  0x72   : > { %p3563_p11 = pnand %p3561_p9, %p3547_p6  ;;  %p3569_p8 = scmp.lt.s32.totalorder %s3567_s29, %s3560_s8 }
  0x74   : > { %p3564_p0 = pneg %p3563_p11  ;;  %p3570_p12 = por %p3569_p8, %p3568_p5 }
  0x76   : > { %p3571_p2 = pnand %p3570_p12, %p3564_p0 }
  0x78   : > { %3574 = shalt.err (!%p3571_p2)
}
  0x79   : > { %s5330_s6 = smov 4   ;;  %s5331_s1 = smov 64  }
  0x7a   : > { %3290 = dma.hbm_to_vmem [thread:$0]  (!%p3897_p4), %s3883_s9, 2048, %s3901_s20, %s3903_s4, %s5331_s1, %s5331_s1, %s5330_s6  }
  0x7b   : > { %p5332_p6 = scmp.ne.s32.totalorder %s5322_s30, 0 }
  0x7d   : > { %193 = sbr.rel (%p5332_p6) target bundleno = 834 (0x342), region = 32 }
  0x84   : > { %s195_s11 = sand.u32 1, %s3649_s16   ;;  %p5333_p10 = scmp.ne.s32.totalorder %s5318_s27, 0 }
  0x85   : > { %s3937_s23 = sshll.u32 %s195_s11, 7  ;;  %s196_s7 = scalar_lea.sflag [#allocation4], %s195_s11 }
  0x86   : > { %s199_s5 = scalar_lea.vmem [#allocation3], %s3937_s23 }
  0x87   : > { %3620 = dma.done.wait (%p5333_p10), %s196_s7, 2048  }
  0x88   : > { %3622 = vsyncadd (%p5333_p10), %s196_s7, 4294965248  ;;  %p5334_p1 = scmp.ne.s32.totalorder %s5317_s25, 0 }
  0x8a   : > { %3624 = dma.done.wait (%p5334_p1), [#allocation7], 528  }
  0x8b   : > { %3626 = vsyncadd (%p5334_p1), [#allocation7], 4294966768  ;;  %s227_s20 = sand.u32 1, %s3637_s13   ;;  %s2970_s9 = sshll.u32 %s3657_s18, 3  ;;  %vm233_vm0 = vcmask 24576   ;;  %vm480_vm5 = vcmask 27648  }
  0x8c   : > { %s3951_s30 = sshll.u32 %s227_s20, 9  ;;  %vm234_vm1 = vsmask.f32 256  ;;  %vm266_vm3 = vsmask.f32 7938  ;;  %s3150_s25 = sshll.u32 %s3657_s18, 6 }
  0x8d   : > { %vm3956_vm2 = vmand %vm233_vm0, %vm234_vm1  ;;  %v239_v1 = vld [vmem:[#allocation2 + $0xc] sm:$0x1]  ;;  %v242_v2 = vld [vmem:[#allocation2 + $0x18] sm:$0x1]  ;;  %s3999_s27 = scalar_lea.vmem %s199_s5, %s3150_s25 [#allocation3]  ;;  %vm317_vm6 = vsmask.f32 4368 }
  0x8e   : > { %v245_v3 = vld [vmem:[#allocation2 + $0x24] sm:$0x1]  ;;  %v240_v4 = vsel %vm3956_vm2, 0, %v239_v1  ;;  %v243_v5 = vsel %vm3956_vm2, 0, %v242_v2  ;;  %v248_v7 = vld [vmem:[#allocation2 + $0x30] sm:$0x1]  ;;  %vm3970_vm4 = vmand %vm233_vm0, %vm266_vm3 }
  0x8f   : > { %v246_v6 = vsel %vm3956_vm2, 0, %v245_v3  ;;  %241 = vst [vmem:[#allocation2 + $0xc] sm:$0x1] %v240_v4  ;;  %244 = vst [vmem:[#allocation2 + $0x18] sm:$0x1] %v243_v5  ;;  %v249_v8 = vsel %vm3956_vm2, 0, %v248_v7 }
  0x90   : > { %247 = vst [vmem:[#allocation2 + $0x24] sm:$0x1] %v246_v6  ;;  %v251_v9 = vld [vmem:[#allocation2 + $0x3c] sm:$0x1]  ;;  %v254_v10 = vld [vmem:[#allocation2 + $0x48] sm:$0x1]  ;;  %vm4019_vm7 = vmand %vm480_vm5, %vm266_vm3 }
  0x91   : > { %250 = vst [vmem:[#allocation2 + $0x30] sm:$0x1] %v249_v8  ;;  %v252_v12 = vsel %vm3956_vm2, 0, %v251_v9  ;;  %v255_v13 = vsel %vm3956_vm2, 0, %v254_v10  ;;  %v257_v14 = vld [vmem:[#allocation2 + $0x54] sm:$0x1]  ;;  %vm4025_vm8 = vmor %vm234_vm1, %vm317_vm6 }
  0x92   : > { %v260_v15 = vld [vmem:[#allocation2 + $0x60] sm:$0x1]  ;;  %253 = vst [vmem:[#allocation2 + $0x3c] sm:$0x1] %v252_v12  ;;  %256 = vst [vmem:[#allocation2 + $0x48] sm:$0x1] %v255_v13 }
  0x93   : > { %v258_v16 = vsel %vm3956_vm2, 0, %v257_v14  ;;  %v261_v17 = vsel %vm3956_vm2, 0, %v260_v15  ;;  %v271_v18 = vld [vmem:[#allocation2 + $0x14] sm:$0x1]  ;;  %v274_v19 = vld [vmem:[#allocation2 + $0x20] sm:$0x1] }
  0x94   : > { %259 = vst [vmem:[#allocation2 + $0x54] sm:$0x1] %v258_v16  ;;  %262 = vst [vmem:[#allocation2 + $0x60] sm:$0x1] %v261_v17  ;;  %v272_v20 = vsel %vm3970_vm4, 0, %v271_v18  ;;  %v275_v21 = vsel %vm3970_vm4, 0, %v274_v19 }
  0x95   : > { %v277_v22 = vld [vmem:[#allocation2 + $0x2c] sm:$0x1]  ;;  %v280_v23 = vld [vmem:[#allocation2 + $0x38] sm:$0x1]  ;;  %273 = vst [vmem:[#allocation2 + $0x14] sm:$0x1] %v272_v20 }
  0x96   : > { %276 = vst [vmem:[#allocation2 + $0x20] sm:$0x1] %v275_v21  ;;  %v278_v24 = vsel %vm3970_vm4, 0, %v277_v22  ;;  %v281_v25 = vsel %vm3970_vm4, 0, %v280_v23  ;;  %v283_v26 = vld [vmem:[#allocation2 + $0x44] sm:$0x1] }
  0x97   : > { %v286_v27 = vld [vmem:[#allocation2 + $0x50] sm:$0x1]  ;;  %279 = vst [vmem:[#allocation2 + $0x2c] sm:$0x1] %v278_v24  ;;  %282 = vst [vmem:[#allocation2 + $0x38] sm:$0x1] %v281_v25 }
  0x98   : > { %v284_v28 = vsel %vm3970_vm4, 0, %v283_v26  ;;  %v287_v29 = vsel %vm3970_vm4, 0, %v286_v27  ;;  %v289_v30 = vld [vmem:[#allocation2 + $0x5c] sm:$0x1]  ;;  %v292_v31 = vld [vmem:[#allocation2 + $0x68] sm:$0x1] }
  0x99   : > { %285 = vst [vmem:[#allocation2 + $0x44] sm:$0x1] %v284_v28  ;;  %288 = vst [vmem:[#allocation2 + $0x50] sm:$0x1] %v287_v29  ;;  %v290_v32 = vsel %vm3970_vm4, 0, %v289_v30  ;;  %v293_v33 = vsel %vm3970_vm4, 0, %v292_v31 }
  0x9a   : > { %v236_v34 = vld [vmem:[#allocation2] sm:$0x1]  ;;  %v263_v35 = vld [vmem:[#allocation2 + $0x6c] sm:$0x1]  ;;  %291 = vst [vmem:[#allocation2 + $0x5c] sm:$0x1] %v290_v32 }
  0x9b   : > { %294 = vst [vmem:[#allocation2 + $0x68] sm:$0x1] %v293_v33  ;;  %v237_v36 = vsel %vm3956_vm2, 0, %v236_v34  ;;  %v264_v37 = vsel %vm3956_vm2, 0, %v263_v35  ;;  %v268_v38 = vld [vmem:[#allocation2 + $0x8] sm:$0x1] }
  0x9c   : > { %v295_v39 = vld [vmem:[#allocation2 + $0x74] sm:$0x1]  ;;  %238 = vst [vmem:[#allocation2] sm:$0x1] %v237_v36  ;;  %265 = vst [vmem:[#allocation2 + $0x6c] sm:$0x1] %v264_v37 }
  0x9d   : > { %v269_v40 = vsel %vm3970_vm4, 0, %v268_v38  ;;  %v296_v41 = vsel %vm3970_vm4, 0, %v295_v39  ;;  %v301_v42 = vld [vmem:[%s3999_s27] sm:$0xf]  ;;  %v302_v45 = vld [vmem:[%s3999_s27 + $0x4] sm:$0xf] }
  0x9e   : > { %270 = vst [vmem:[#allocation2 + $0x8] sm:$0x1] %v269_v40  ;;  %297 = vst [vmem:[#allocation2 + $0x74] sm:$0x1] %v296_v41  ;;  %v320_v43 = vshrl.u32 %v301_v42, 16  ;;  %v323_v44 = vshll.u32 %v301_v42, 16 }
  0x9f   : > { %v303_v46 = vld [vmem:[%s3999_s27 + $0x8] sm:$0xf]  ;;  %v328_v47 = vshrl.u32 %v302_v45, 16  ;;  %v331_v48 = vshll.u32 %v302_v45, 16  ;;  %v482_v52 = vld [vmem:[#allocation2 + $0xc] sm:$0xf] }
  0xa0   : > { %v337_v49 = vshrl.u32 %v303_v46, 16  ;;  %v340_v50 = vshll.u32 %v303_v46, 16  ;;  %v322_v51 = vrot.slane %v320_v43, 7  ;;  %v304_v53 = vld [vmem:[%s3999_s27 + $0xc] sm:$0xf]  ;;  %s4098_s24 = scalar_lea.vmem [#allocation9], %s3951_s30 }
  0xa1   : > { %v330_v55 = vrot.slane %v328_v47, 7  ;;  %v490_v57 = vld [vmem:[#allocation2 + $0x18] sm:$0xf]  ;;  %v345_v58 = vshrl.u32 %v304_v53, 16  ;;  %v487_v62 = vld [vmem:[#allocation2 + $0x14] sm:$0x1] }
  0xa2   : > { %v339_v56 = vrot.slane %v337_v49, 7  ;;  %v325_v59 = vor.u32 %v323_v44, %v322_v51  ;;  %v326_v61 = vrot.slane %v322_v51, 4  ;;  %v348_v63 = vshll.u32 %v304_v53, 16  ;;  %v305_v1 = vld [vmem:[%s3999_s27 + $0x10] sm:$0xf]  ;;  %p2973_p4 = scmp.ne.s32.totalorder %s3657_s18, 0 }
  0xa3   : > { %v333_v2 = vor.u32 %v331_v48, %v330_v55  ;;  %v335_v3 = vrot.slane %v330_v55, 4  ;;  %v306_v6 = vld [vmem:[%s3999_s27 + $0x14] sm:$0xf]  ;;  %v347_v8 = vrot.slane %v345_v58, 7  ;;  %v354_v9 = vshrl.u32 %v305_v1, 16 }
  0xa4   : > { %v342_v4 = vor.u32 %v340_v50, %v339_v56  ;;  %v343_v5 = vrot.slane %v339_v56, 4  ;;  %v483_v7 = vsel %vm4019_vm7, %v325_v59, %v482_v52  ;;  %v357_v10 = vshll.u32 %v305_v1, 16  ;;  %v307_v11 = vld [vmem:[%s3999_s27 + $0x18] sm:$0xf]  ;;  %v494_v15 = vld [vmem:[#allocation2 + $0x20] sm:$0x1] }
  0xa5   : > { %484 = vst [vmem:[#allocation2 + $0xc] sm:$0xf] %v483_v7  ;;  %v334_v12 = vsel %vm4025_vm8, %v326_v61, %v333_v2  ;;  %v488_v13 = vsel %vm3956_vm2, %v335_v3, %v487_v62  ;;  %v362_v16 = vshrl.u32 %v306_v6, 16  ;;  %v308_v17 = vld [vmem:[%s3999_s27 + $0x1c] sm:$0xf]  ;;  %v350_v18 = vor.u32 %v348_v63, %v347_v8 }
  0xa6   : > { %v491_v14 = vsel %vm4019_vm7, %v342_v4, %v490_v57  ;;  %486 = vst.msk [vmem:[#allocation2 + $0x10] sm:$0xf] %vm480_vm5, %v334_v12  ;;  %489 = vst [vmem:[#allocation2 + $0x14] sm:$0x1] %v488_v13  ;;  %v352_v19 = vrot.slane %v347_v8, 4  ;;  %v356_v20 = vrot.slane %v354_v9, 7 }
  0xa7   : > { %492 = vst [vmem:[#allocation2 + $0x18] sm:$0xf] %v491_v14  ;;  %v497_v21 = vld [vmem:[#allocation2 + $0x24] sm:$0xf]  ;;  %v365_v22 = vshll.u32 %v306_v6, 16  ;;  %v364_v23 = vrot.slane %v362_v16, 7  ;;  %v351_v28 = vsel %vm4025_vm8, %v343_v5, %v350_v18 }
  0xa8   : > { %v371_v24 = vshrl.u32 %v307_v11, 16  ;;  %v374_v25 = vshll.u32 %v307_v11, 16  ;;  %v379_v26 = vshrl.u32 %v308_v17, 16  ;;  %v309_v27 = vld [vmem:[%s3999_s27 + $0x20] sm:$0xf]  ;;  %v495_v29 = vsel %vm3956_vm2, %v352_v19, %v494_v15 }
  0xa9   : > { %v359_v30 = vor.u32 %v357_v10, %v356_v20  ;;  %v360_v31 = vrot.slane %v356_v20, 4  ;;  %v501_v32 = vld [vmem:[#allocation2 + $0x2c] sm:$0x1]  ;;  %v504_v33 = vld [vmem:[#allocation2 + $0x30] sm:$0xf]  ;;  %v367_v34 = vor.u32 %v365_v22, %v364_v23  ;;  %v369_v35 = vrot.slane %v364_v23, 4 }
  0xaa   : > { %493 = vst.msk [vmem:[#allocation2 + $0x1c] sm:$0xf] %vm480_vm5, %v351_v28  ;;  %496 = vst [vmem:[#allocation2 + $0x20] sm:$0x1] %v495_v29  ;;  %v373_v36 = vrot.slane %v371_v24, 7  ;;  %v381_v37 = vrot.slane %v379_v26, 7 }
  0xab   : > { %v310_v38 = vld [vmem:[%s3999_s27 + $0x24] sm:$0xf]  ;;  %v498_v39 = vsel %vm4019_vm7, %v359_v30, %v497_v21  ;;  %v382_v40 = vshll.u32 %v308_v17, 16  ;;  %v388_v41 = vshrl.u32 %v309_v27, 16  ;;  %v391_v42 = vshll.u32 %v309_v27, 16 }
  0xac   : > { %v311_v43 = vld [vmem:[%s3999_s27 + $0x28] sm:$0xf]  ;;  %499 = vst [vmem:[#allocation2 + $0x24] sm:$0xf] %v498_v39  ;;  %v368_v44 = vsel %vm4025_vm8, %v360_v31, %v367_v34  ;;  %v502_v45 = vsel %vm3956_vm2, %v369_v35, %v501_v32  ;;  %v376_v46 = vor.u32 %v374_v25, %v373_v36  ;;  %v377_v47 = vrot.slane %v373_v36, 4 }
  0xad   : > { %v508_v48 = vld [vmem:[#allocation2 + $0x38] sm:$0x1]  ;;  %v511_v49 = vld [vmem:[#allocation2 + $0x3c] sm:$0xf]  ;;  %500 = vst.msk [vmem:[#allocation2 + $0x28] sm:$0xf] %vm480_vm5, %v368_v44  ;;  %v384_v50 = vor.u32 %v382_v40, %v381_v37 }
  0xae   : > { %503 = vst [vmem:[#allocation2 + $0x2c] sm:$0x1] %v502_v45  ;;  %v386_v51 = vrot.slane %v381_v37, 4  ;;  %v390_v52 = vrot.slane %v388_v41, 7  ;;  %v396_v53 = vshrl.u32 %v310_v38, 16  ;;  %v505_v56 = vsel %vm4019_vm7, %v376_v46, %v504_v33 }
  0xaf   : > { %v312_v55 = vld [vmem:[%s3999_s27 + $0x2c] sm:$0xf]  ;;  %v399_v57 = vshll.u32 %v310_v38, 16  ;;  %v405_v58 = vshrl.u32 %v311_v43, 16  ;;  %v408_v59 = vshll.u32 %v311_v43, 16  ;;  %v385_v62 = vsel %vm4025_vm8, %v377_v47, %v384_v50 }
  0xb0   : > { %v313_v61 = vld [vmem:[%s3999_s27 + $0x30] sm:$0xf]  ;;  %506 = vst [vmem:[#allocation2 + $0x30] sm:$0xf] %v505_v56  ;;  %v509_v63 = vsel %vm3956_vm2, %v386_v51, %v508_v48  ;;  %v393_v1 = vor.u32 %v391_v42, %v390_v52  ;;  %v394_v2 = vrot.slane %v390_v52, 4  ;;  %v398_v5 = vrot.slane %v396_v53, 7 }
  0xb1   : > { %v515_v3 = vld [vmem:[#allocation2 + $0x44] sm:$0x1]  ;;  %v314_v4 = vld [vmem:[%s3999_s27 + $0x34] sm:$0xf]  ;;  %507 = vst.msk [vmem:[#allocation2 + $0x34] sm:$0xf] %vm480_vm5, %v385_v62 }
  0xb2   : > { %510 = vst [vmem:[#allocation2 + $0x38] sm:$0x1] %v509_v63  ;;  %v407_v6 = vrot.slane %v405_v58, 7  ;;  %v518_v7 = vld [vmem:[#allocation2 + $0x48] sm:$0xf]  ;;  %v413_v8 = vshrl.u32 %v312_v55, 16  ;;  %v512_v10 = vsel %vm4019_vm7, %v393_v1, %v511_v49  ;;  %v401_v15 = vor.u32 %v399_v57, %v398_v5 }
  0xb3   : > { %v416_v9 = vshll.u32 %v312_v55, 16  ;;  %v422_v11 = vshrl.u32 %v313_v61, 16  ;;  %v425_v12 = vshll.u32 %v313_v61, 16  ;;  %v430_v13 = vshrl.u32 %v314_v4, 16  ;;  %v315_v14 = vld [vmem:[%s3999_s27 + $0x38] sm:$0xf] }
  0xb4   : > { %513 = vst [vmem:[#allocation2 + $0x3c] sm:$0xf] %v512_v10  ;;  %v403_v16 = vrot.slane %v398_v5, 4  ;;  %v410_v17 = vor.u32 %v408_v59, %v407_v6  ;;  %v411_v18 = vrot.slane %v407_v6, 4  ;;  %v415_v19 = vrot.slane %v413_v8, 7 }
  0xb5   : > { %v522_v20 = vld [vmem:[#allocation2 + $0x50] sm:$0x1]  ;;  %v424_v21 = vrot.slane %v422_v11, 7  ;;  %v432_v22 = vrot.slane %v430_v13, 7  ;;  %v433_v23 = vshll.u32 %v314_v4, 16  ;;  %v402_v24 = vsel %vm4025_vm8, %v394_v2, %v401_v15 }
  0xb6   : > { %v516_v25 = vsel %vm3956_vm2, %v403_v16, %v515_v3  ;;  %v519_v26 = vsel %vm4019_vm7, %v410_v17, %v518_v7  ;;  %v525_v27 = vld [vmem:[#allocation2 + $0x54] sm:$0xf]  ;;  %v439_v28 = vshrl.u32 %v315_v14, 16  ;;  %v316_v29 = vld [vmem:[%s3999_s27 + $0x3c] sm:$0xf]  ;;  %v418_v30 = vor.u32 %v416_v9, %v415_v19 }
  0xb7   : > { %514 = vst.msk [vmem:[#allocation2 + $0x40] sm:$0xf] %vm480_vm5, %v402_v24  ;;  %517 = vst [vmem:[#allocation2 + $0x44] sm:$0x1] %v516_v25  ;;  %v420_v31 = vrot.slane %v415_v19, 4  ;;  %v427_v32 = vor.u32 %v425_v12, %v424_v21  ;;  %v428_v33 = vrot.slane %v424_v21, 4  ;;  %v435_v35 = vor.u32 %v433_v23, %v432_v22 }
  0xb8   : > { %520 = vst [vmem:[#allocation2 + $0x48] sm:$0xf] %v519_v26  ;;  %v529_v34 = vld [vmem:[#allocation2 + $0x5c] sm:$0x1]  ;;  %v437_v36 = vrot.slane %v432_v22, 4  ;;  %v441_v37 = vrot.slane %v439_v28, 7  ;;  %v419_v39 = vsel %vm4025_vm8, %v411_v18, %v418_v30 }
  0xb9   : > { %v442_v38 = vshll.u32 %v315_v14, 16  ;;  %v523_v40 = vsel %vm3956_vm2, %v420_v31, %v522_v20  ;;  %v526_v41 = vsel %vm4019_vm7, %v427_v32, %v525_v27  ;;  %v532_v42 = vld [vmem:[#allocation2 + $0x60] sm:$0xf]  ;;  %v447_v43 = vshrl.u32 %v316_v29, 16  ;;  %521 = vst.msk [vmem:[#allocation2 + $0x4c] sm:$0xf] %vm480_vm5, %v419_v39 }
  0xba   : > { %524 = vst [vmem:[#allocation2 + $0x50] sm:$0x1] %v523_v40  ;;  %527 = vst [vmem:[#allocation2 + $0x54] sm:$0xf] %v526_v41  ;;  %v436_v44 = vsel %vm4025_vm8, %v428_v33, %v435_v35  ;;  %v530_v45 = vsel %vm3956_vm2, %v437_v36, %v529_v34  ;;  %v445_v47 = vrot.slane %v441_v37, 4  ;;  %v450_v49 = vshll.u32 %v316_v29, 16 }
  0xbb   : > { %v444_v46 = vor.u32 %v442_v38, %v441_v37  ;;  %528 = vst.msk [vmem:[#allocation2 + $0x58] sm:$0xf] %vm480_vm5, %v436_v44  ;;  %531 = vst [vmem:[#allocation2 + $0x5c] sm:$0x1] %v530_v45  ;;  %v449_v48 = vrot.slane %v447_v43, 7  ;;  %542 = sbr.rel (%p2973_p4) target bundleno = 194 (0xc2), region = 48 }
  0xbc   : > { %v536_v51 = vld [vmem:[#allocation2 + $0x68] sm:$0x1]  ;;  %v543_v57 = vld [vmem:[#allocation2] sm:$0xf] (!%p2973_p4)  ;;  %v3680_v61 = vmov (!%p2973_p4), 0  }
  0xbd   : > { %v533_v50 = vsel %vm4019_vm7, %v444_v46, %v532_v42  ;;  %v452_v52 = vor.u32 %v450_v49, %v449_v48  ;;  %v454_v53 = vrot.slane %v449_v48, 4  ;;  %v547_v58 = vld [vmem:[#allocation2 + $0x8] sm:$0x1] (!%p2973_p4)  ;;  %v544_v59 = vsel (!%p2973_p4), %vm4019_vm7, 0, %v543_v57  ;;  %546 = vst.msk [vmem:[#allocation2 + $0x4] sm:$0xf] (!%p2973_p4), %vm480_vm5, %v3680_v61 }
  0xbe   : > { %534 = vst [vmem:[#allocation2 + $0x60] sm:$0xf] %v533_v50  ;;  %v548_v62 = vsel (!%p2973_p4), %vm3956_vm2, 0, %v547_v58  ;;  %545 = vst [vmem:[#allocation2] sm:$0xf] (!%p2973_p4), %v544_v59 }
  0xbf   : > { %v453_v55 = vsel %vm4025_vm8, %v445_v47, %v452_v52  ;;  %v537_v56 = vsel %vm3956_vm2, %v454_v53, %v536_v51  ;;  %549 = vst [vmem:[#allocation2 + $0x8] sm:$0x1] (!%p2973_p4), %v548_v62 }
  0xc0   : > { %535 = vst.msk [vmem:[#allocation2 + $0x64] sm:$0xf] %vm480_vm5, %v453_v55  ;;  %538 = vst [vmem:[#allocation2 + $0x68] sm:$0x1] %v537_v56 }
  0xc2 PF: > { %p2974_p3 = scmp.le.s32.totalorder %s3657_s18, 0 }
  0xc3   : > { %s2975_s4 = sadd.s32 (!%p2974_p3), 4294967295, %s2970_s9 }
  0xc4   : > { %553 = sbr.rel (%p2974_p3) target bundleno = 208 (0xd0), region = 52  ;;  %s3151_s8 = sshll.u32 (!%p2974_p3), %s2975_s4, 3 }
  0xc5   : > { %s557_s26 = scalar_lea.vmem (!%p2974_p3), %s199_s5, %s3151_s8 [#allocation3]  ;;  %v580_v8 = vld [vmem:[#allocation2] sm:$0xf] (!%p2974_p3) }
  0xc6   : > { %v558_v63 = vld [vmem:[%s557_s26] sm:$0xf] (!%p2974_p3)  ;;  %v559_v1 = vld [vmem:[%s557_s26 + $0x4] sm:$0xf] (!%p2974_p3)  ;;  %v584_v9 = vld [vmem:[#allocation2 + $0x8] sm:$0x1] (!%p2974_p3) }
  0xc7   : > { %v561_v2 = vshrl.u32 (!%p2974_p3), %v558_v63, 16  ;;  %v564_v3 = vshll.u32 (!%p2974_p3), %v558_v63, 16  ;;  %v569_v4 = vshrl.u32 (!%p2974_p3), %v559_v1, 16  ;;  %v572_v5 = vshll.u32 (!%p2974_p3), %v559_v1, 16 }
  0xc9   : > { %v563_v6 = vrot.slane (!%p2974_p3), %v561_v2, 7  ;;  %v571_v7 = vrot.slane (!%p2974_p3), %v569_v4, 7 }
  0xcb   : > { %v566_v10 = vor.u32 %v564_v3, %v563_v6  ;;  %v567_v11 = vrot.slane %v563_v6, 4  ;;  %v574_v12 = vor.u32 %v572_v5, %v571_v7  ;;  %v576_v13 = vrot.slane %v571_v7, 4 }
  0xcd   : > { %v581_v14 = vsel %vm4019_vm7, %v566_v10, %v580_v8  ;;  %v575_v15 = vsel %vm4025_vm8, %v567_v11, %v574_v12  ;;  %v585_v16 = vsel %vm3956_vm2, %v576_v13, %v584_v9 }
  0xce   : > { %582 = vst [vmem:[#allocation2] sm:$0xf] %v581_v14  ;;  %583 = vst.msk [vmem:[#allocation2 + $0x4] sm:$0xf] %vm480_vm5, %v575_v15 }
  0xcf   : > { %586 = vst [vmem:[#allocation2 + $0x8] sm:$0x1] %v585_v16 }
  0xd0 PF: > { %p2978_p7 = scmp.ne.s32.totalorder %s3657_s18, 1 }
  0xd1   : > { %v592_v17 = vld [vmem:[#allocation2 + $0x6c] sm:$0xf] (!%p2978_p7)  ;;  %v596_v18 = vld [vmem:[#allocation2 + $0x74] sm:$0x1] (!%p2978_p7)  ;;  %v3681_v20 = vmov (!%p2978_p7), 0  }
  0xd2   : > { %590 = sbr.rel (%p2978_p7) target bundleno = 217 (0xd9), region = 56  ;;  %v593_v19 = vsel (!%p2978_p7), %vm4019_vm7, 0, %v592_v17  ;;  %595 = vst.msk [vmem:[#allocation2 + $0x70] sm:$0xf] (!%p2978_p7), %vm480_vm5, %v3681_v20  ;;  %v597_v21 = vsel (!%p2978_p7), %vm3956_vm2, 0, %v596_v18 }
  0xd3   : > { %594 = vst [vmem:[#allocation2 + $0x6c] sm:$0xf] (!%p2978_p7), %v593_v19  ;;  %598 = vst [vmem:[#allocation2 + $0x74] sm:$0x1] (!%p2978_p7), %v597_v21 }
  0xd9 PF: > { %p2979_p13 = scmp.ge.s32.totalorder %s3657_s18, 1 }
  0xda   : > { %v2982_v22 = vld [vmem:[%s3999_s27 + $0x40] sm:$0xf] (!%p2979_p13)  ;;  %v2983_v23 = vld [vmem:[%s3999_s27 + $0x44] sm:$0xf] (!%p2979_p13)  ;;  %v630_v30 = vld [vmem:[#allocation2 + $0x6c] sm:$0xf] (!%p2979_p13) }
  0xdb   : > { %602 = sbr.rel (%p2979_p13) target bundleno = 228 (0xe4), region = 60  ;;  %v610_v24 = vshrl.u32 (!%p2979_p13), %v2982_v22, 16  ;;  %v613_v25 = vshll.u32 (!%p2979_p13), %v2982_v22, 16  ;;  %v618_v26 = vshrl.u32 (!%p2979_p13), %v2983_v23, 16  ;;  %v621_v27 = vshll.u32 (!%p2979_p13), %v2983_v23, 16 }
  0xdc   : > { %v634_v31 = vld [vmem:[#allocation2 + $0x74] sm:$0x1] (!%p2979_p13) }
  0xdd   : > { %v612_v28 = vrot.slane (!%p2979_p13), %v610_v24, 7  ;;  %v620_v29 = vrot.slane (!%p2979_p13), %v618_v26, 7 }
  0xdf   : > { %v615_v32 = vor.u32 (!%p2979_p13), %v613_v25, %v612_v28  ;;  %v616_v33 = vrot.slane (!%p2979_p13), %v612_v28, 4  ;;  %v623_v34 = vor.u32 (!%p2979_p13), %v621_v27, %v620_v29  ;;  %v625_v35 = vrot.slane (!%p2979_p13), %v620_v29, 4 }
  0xe1   : > { %v631_v36 = vsel (!%p2979_p13), %vm4019_vm7, %v615_v32, %v630_v30  ;;  %v624_v37 = vsel (!%p2979_p13), %vm4025_vm8, %v616_v33, %v623_v34  ;;  %v635_v38 = vsel (!%p2979_p13), %vm3956_vm2, %v625_v35, %v634_v31 }
  0xe2   : > { %632 = vst [vmem:[#allocation2 + $0x6c] sm:$0xf] %v631_v36  ;;  %633 = vst.msk [vmem:[#allocation2 + $0x70] sm:$0xf] %vm480_vm5, %v624_v37 }
  0xe3   : > { %636 = vst [vmem:[#allocation2 + $0x74] sm:$0x1] %v635_v38 }
  0xe4 PF: > { %v669_v39 = vld [vmem:[#allocation2 + $0xc] sm:$0xf]  ;;  %v670_v40 = vld [vmem:[#allocation2 + $0x10] sm:$0xf]  ;;  %v671_v42 = vld [vmem:[#allocation2 + $0x18] sm:$0xf] }
  0xe5   : > { %v4134_v41 = vcombine.low %v669_v39, %v670_v40  ;;  %v672_v43 = vld [vmem:[#allocation2 + $0x1c] sm:$0xf]  ;;  %v4138_v54 = vld [vmem:[#allocation2 + $0x8] ss:$0 sps:$4 sm:$0x11]   ;;  %s3682_s12 = smov 8  }
  0xe6   : > { %v4136_v44 = vcombine.low %v671_v42, %v672_v43  ;;  %v640_v60 = vld [vmem:[#allocation2 + $0x10] sm:$0xf]  ;;  %v662_v0 = vld [vmem:[#allocation2 + $0xc] sm:$0xe]  ;;  %v1331_v45 = vshrl.u32 %v4138_v54, 16  ;;  %v814_v50 = vshll.u32 %v4138_v54, 16 }
  0xe7   : > { %5343 = vst [vmem:[#allocation19_spill] sm:$0xff] %v4134_v41  ;;  %958 = vrot.lane.b32.xlu0 %v4134_v41, %s3682_s12  ;;  %v4145_v46 = vld [vmem:[#allocation2 + $0x14] ss:$0 sps:$4 sm:$0x11]   ;;  %vm805_vm9 = vsmask.f32 7424  ;;  %v3027_v47 = vcombine.low %v662_v0, %v640_v60 }
  0xe8   : > { %5344 = vst [vmem:[#allocation20_spill] sm:$0xff] %v4136_v44  ;;  %960 = vrot.lane.b32.xlu1 %v4136_v44, %s3682_s12  ;;  %v638_v48 = vld [vmem:[#allocation2 + $0x4] sm:$0xf]  ;;  %v661_v49 = vld [vmem:[#allocation2] sm:$0xe]  ;;  %v826_v51 = vshll.u32 %v4145_v46, 16 }
  0xe9   : > { %v1334_v52 = vshrl.u32 %v3027_v47, 16  ;;  %v1336_v53 = vshll.u32 %v3027_v47, 16  ;;  %v3026_v55 = vcombine.low %v661_v49, %v638_v48  ;;  %s3683_s29 = smov 4   ;;  %v637_v56 = vld [vmem:[#allocation2] sm:$0xf]  ;;  %v4152_v63 = vrot.slane %v814_v50, 1 }
  0xea   : > { %v693_v57 = vld [vmem:[#allocation2 + $0xc] sm:$0xe]  ;;  %v4150_v58 = vrot.slane %v826_v51, 1  ;;  %v4154_v1 = vld [vmem:[#allocation2 + $0x14] ss:$0 sps:$4 sm:$0x11]   ;;  %v4156_v6 = vcombine.low %v637_v56, %v638_v48 }
  0xeb   : > { %1405 = vrot.lane.b32.xlu0 %v1331_v45, %s3683_s29  ;;  %v1338_v59 = vrot.slane %v1336_v53, 1  ;;  %v1324_v61 = vshrl.u32 %v3026_v55, 16  ;;  %v1326_v62 = vshll.u32 %v3026_v55, 16  ;;  %v3034_v2 = vcombine.low %v693_v57, %v670_v40  ;;  %v694_v3 = vld [vmem:[#allocation2 + $0x18] sm:$0xe]  ;;  %s3684_s6 = smov 12  }
  0xec   : > { %v4158_v7 = vld [vmem:[#allocation2 + $0x20] ss:$0 sps:$4 sm:$0x11]   ;;  %v3035_v8 = vcombine.low %v694_v3, %v672_v43  ;;  %v639_v9 = vld [vmem:[#allocation2 + $0xc] sm:$0xf]  ;;  %v1006_v10 = vshll.u32 %v4154_v1, 16 }
  0xed   : > { %v1339_v4 = vor.u32 %v1338_v59, %v1334_v52  ;;  %v1328_v5 = vrot.slane %v1326_v62, 1  ;;  %v1476_v11 = vshrl.u32 %v3034_v2, 16  ;;  %v1478_v12 = vshll.u32 %v3034_v2, 16  ;;  %v4164_v16 = vld [vmem:[#allocation2 + $0x1c] sm:$0xf]  ;;  %v3458_v37 = vld [vmem:[#allocation6 + $0x8] sm:$0xff]  }
  0xee   : > { %v1018_v15 = vshll.u32 %v4158_v7, 16  ;;  %v4167_v17 = vrot.slane %v1006_v10, 1  ;;  %v1486_v19 = vshrl.u32 %v3035_v8, 16  ;;  %v1488_v20 = vshll.u32 %v3035_v8, 16  ;;  %v663_v21 = vld [vmem:[#allocation2 + $0x18] sm:$0xe]  ;;  %3208 = vmatprep.subr.bf16.mxu1 %v3458_v37 }
  0xef   : > { %v1340_v13 = vsel %vm805_vm9, %v1339_v4, %v4150_v58  ;;  %v1329_v14 = vor.u32 %v1328_v5, %v1324_v61  ;;  %v1480_v18 = vrot.slane %v1478_v12, 1  ;;  %v4169_v22 = vcombine.low %v639_v9, %v640_v60  ;;  %v4188_v35 = vld [vmem:[#allocation2 + $0x20] ss:$0 sps:$4 sm:$0x11]   ;;  %v4190_v36 = vld [vmem:[#allocation2 + $0x28] sm:$0xf]  ;;  %3209 = vmatpush3.bf16.msra.mxu1 %v3458_v37 }
  0xf0   : > { %1407 = vrot.lane.b32.xlu1 %v1340_v13, %s3683_s29  ;;  %v809_v24 = vshll.u32 %v4156_v6, 16  ;;  %v1341_v26 = vshrl.u32 %v4145_v46, 16  ;;  %v1490_v27 = vrot.slane %v1488_v20, 1  ;;  %v4176_v28 = vrot.slane %v1018_v15, 1  ;;  %v664_v40 = vld [vmem:[#allocation2 + $0x24] sm:$0xe] }
  0xf1   : > { %v1330_v23 = vsel %vm805_vm9, %v1329_v14, %v4152_v63  ;;  %v1481_v25 = vor.u32 %v1480_v18, %v1476_v11  ;;  %v3028_v29 = vcombine.low %v663_v21, %v4164_v16  ;;  %v807_v32 = vshrl.u32 %v4156_v6, 16  ;;  %v4208_v53 = vld [vmem:[#allocation2 + $0x2c] ss:$0 sps:$4 sm:$0x11]   ;;  %v695_v2 = vld [vmem:[#allocation2 + $0x24] sm:$0xe] }
  0xf2   : > { %1403 = vrot.lane.b32.xlu0 %v1330_v23, %s3683_s29  ;;  %v1491_v31 = vor.u32 %v1490_v27, %v1486_v19  ;;  %v811_v33 = vrot.slane %v809_v24, 1  ;;  %v821_v34 = vshll.u32 %v4169_v22, 16  ;;  %v819_v42 = vshrl.u32 %v4169_v22, 16  ;;  %v673_v4 = vld [vmem:[#allocation2 + $0x24] sm:$0xf]  ;;  %v3460_v9 = vld [vmem:[#allocation6] sm:$0xff]  }
  0xf3   : > { %v4181_v30 = vsel %vm805_vm9, %v1481_v25, %v4167_v17  ;;  %v1346_v39 = vshll.u32 %v3028_v29, 16  ;;  %v5291_v60 = vshrl.u32 %v4154_v1, 16  ;;  %v3029_v45 = vcombine.low %v664_v40, %v4190_v36  ;;  %v674_v5 = vld [vmem:[#allocation2 + $0x28] sm:$0xf]  ;;  %3190 = vmatprep.subr.bf16.mxu0 %v3460_v9  ;;  %v675_v15 = vld [vmem:[#allocation2 + $0x30] sm:$0xf] }
  0xf4   : > { %1555 = vrot.lane.b32.xlu1 %v4181_v30, %s3684_s6  ;;  %v4194_v38 = vsel %vm805_vm9, %v1491_v31, %v4176_v28  ;;  %v823_v43 = vrot.slane %v821_v34, 1  ;;  %v812_v0 = vor.u32 %v811_v33, %v807_v32  ;;  %v838_v47 = vshll.u32 %v4188_v35, 16  ;;  %v696_v18 = vld [vmem:[#allocation2 + $0x30] sm:$0xe]  ;;  %3191 = vmatpush3.bf16.msra.mxu0 %v3460_v9  ;;  %v676_v24 = vld [vmem:[#allocation2 + $0x34] sm:$0xf] }
  0xf5   : > { %v1344_v48 = vshrl.u32 %v3028_v29, 16  ;;  %v1348_v49 = vrot.slane %v1346_v39, 1  ;;  %v1001_v50 = vshll.u32 %v4134_v41, 16  ;;  %v5290_v51 = vshrl.u32 %v4158_v7, 16  ;;  %s2797_s1 = scalar_lea.sflag [#allocation5], %s227_s20 }
  0xf6   : > { %1409 = vrot.lane.b32.xlu0 %v1341_v26, %s3683_s29  ;;  %v824_v52 = vor.u32 %v823_v43, %v819_v42  ;;  %v999_v55 = vshrl.u32 %v4134_v41, 16  ;;  %v1356_v56 = vshll.u32 %v3029_v45, 16  ;;  %v817_v57 = vsel %vm805_vm9, %v812_v0, %v4152_v63  ;;  %v4232_v20 = vld [vmem:[#allocation2 + $0x2c] ss:$0 sps:$4 sm:$0x11]  }
  0xf7   : > { %v4216_v59 = vrot.slane %v838_v47, 1  ;;  %v1349_v61 = vor.u32 %v1348_v49, %v1344_v48  ;;  %v1003_v62 = vrot.slane %v1001_v50, 1  ;;  %v850_v8 = vshll.u32 %v4208_v53, 16  ;;  %v4250_v40 = vld [vmem:[#allocation2 + $0x38] ss:$0 sps:$4 sm:$0x11]  }
  0xf8   : > { %1435 = vrot.lane.b32.xlu1 %v4154_v1, %s3682_s12  ;;  %v829_v3 = vsel %vm805_vm9, %v824_v52, %v4150_v58  ;;  %v1354_v63 = vshrl.u32 %v3029_v45, 16  ;;  %v1358_v10 = vrot.slane %v1356_v56, 1  ;;  %v1013_v11 = vshll.u32 %v4136_v44, 16  ;;  %v641_v42 = vld [vmem:[#allocation2 + $0x18] sm:$0xf] }
  0xf9   : > { %v3036_v12 = vcombine.low %v695_v2, %v674_v5  ;;  %v1350_v13 = vsel %vm805_vm9, %v1349_v61, %v4216_v59  ;;  %v1004_v14 = vor.u32 %v1003_v62, %v999_v55  ;;  %v4229_v58 = vcombine.low %v673_v4, %v674_v5  ;;  %v643_v43 = vld [vmem:[#allocation2 + $0x24] sm:$0xf]  ;;  %v4266_v56 = vld [vmem:[#allocation2 + $0x34] sm:$0xf] }
  0xfa   : > { %1559 = vrot.lane.b32.xlu0 %v4194_v38, %s3684_s6  ;;  %v1011_v19 = vshrl.u32 %v4136_v44, 16  ;;  %v4235_v21 = vrot.slane %v850_v8, 1  ;;  %v1359_v23 = vor.u32 %v1358_v10, %v1354_v63  ;;  %v1015_v25 = vrot.slane %v1013_v11, 1  ;;  %v4288_v8 = vld [vmem:[#allocation2 + $0x38] ss:$0 sps:$4 sm:$0x11]  }
  0xfb   : > { %5345 = vst [vmem:[#allocation21_spill] sm:$0xff] %v4229_v58  ;;  %v1498_v26 = vshll.u32 %v3036_v12, 16  ;;  %v4239_v27 = vsel %vm805_vm9, %v1004_v14, %v4167_v17  ;;  %v3037_v29 = vcombine.low %v696_v18, %v676_v24  ;;  %v4243_v31 = vcombine.low %v675_v15, %v676_v24  ;;  %v4294_v11 = vld [vmem:[#allocation2 + $0x40] sm:$0xf] }
  0xfc   : > { %1437 = vrot.lane.b32.xlu1 %v4158_v7, %s3682_s12  ;;  %v1030_v32 = vshll.u32 %v4232_v20, 16  ;;  %v1360_v33 = vsel %vm805_vm9, %v1359_v23, %v4235_v21  ;;  %v1016_v34 = vor.u32 %v1015_v25, %v1011_v19  ;;  %v1496_v37 = vshrl.u32 %v3036_v12, 16  ;;  %v666_v12 = vld [vmem:[#allocation2 + $0x3c] sm:$0xe] }
  0xfd   : > { %5346 = vst [vmem:[#allocation22_spill] sm:$0xff] %v4243_v31  ;;  %v1500_v39 = vrot.slane %v1498_v26, 1  ;;  %v1508_v17 = vshll.u32 %v3037_v29, 16  ;;  %v1351_v45 = vshrl.u32 %v4188_v35, 16  ;;  %v4263_v49 = vcombine.low %v641_v42, %v4164_v16 }
  0xfe   : > { %1557 = vrot.lane.b32.xlu0 %v5291_v60, %s3684_s6  ;;  %v4257_v0 = vsel %vm805_vm9, %v1016_v34, %v4176_v28  ;;  %v4260_v47 = vrot.slane %v1030_v32, 1  ;;  %v1042_v50 = vshll.u32 %v4250_v40, 16  ;;  %v1506_v52 = vshrl.u32 %v3037_v29, 16 }
  0xff   : > { %v1501_v48 = vor.u32 %v1500_v39, %v1496_v37  ;;  %v1510_v55 = vrot.slane %v1508_v17, 1  ;;  %v4269_v61 = vcombine.low %v643_v43, %v4190_v36  ;;  %v1361_v16 = vshrl.u32 %v4208_v53, 16 }
 0x100   : > { %1561 = vrot.lane.b32.xlu1 %v5290_v51, %s3684_s6  ;;  %v4279_v62 = vrot.slane %v1042_v50, 1  ;;  %v831_v5 = vshrl.u32 %v4263_v49, 16  ;;  %v5288_v15 = vshrl.u32 %v4232_v20, 16  ;;  %v862_v18 = vshll.u32 %v4288_v8, 16  ;;  %v677_v50 = vld [vmem:[#allocation2 + $0x3c] sm:$0xf] }
 0x101   : > { %v4276_v28 = vsel %vm805_vm9, %v1501_v48, %v4260_v47  ;;  %v1511_v2 = vor.u32 %v1510_v55, %v1506_v52  ;;  %v845_v36 = vshll.u32 %v4269_v61, 16  ;;  %v3031_v19 = vcombine.low %v666_v12, %v4294_v11  ;;  %v678_v52 = vld [vmem:[#allocation2 + $0x40] sm:$0xf]  ;;  %v4333_v12 = vld [vmem:[#allocation2 + $0x44] ss:$0 sps:$4 sm:$0x11]  }
 0x102   : > { %902 = vrot.lane.b32.xlu0 %v817_v57, %s3683_s29  ;;  %v665_v57 = vld [vmem:[#allocation2 + $0x30] sm:$0xe]  ;;  %v1025_v26 = vshll.u32 %v4229_v58, 16  ;;  %v5287_v29 = vshrl.u32 %v4250_v40, 16  ;;  %v4313_v34 = vrot.slane %v862_v18, 1  ;;  %v1023_v42 = vshrl.u32 %v4229_v58, 16 }
 0x103   : > { %v3030_v4 = vcombine.low %v665_v57, %v4266_v56  ;;  %v4292_v9 = vsel %vm805_vm9, %v1511_v2, %v4279_v62  ;;  %v847_v14 = vrot.slane %v845_v36, 1  ;;  %v1376_v37 = vshll.u32 %v3031_v19, 16  ;;  %v679_v36 = vld [vmem:[#allocation2 + $0x48] sm:$0xf] }
 0x104   : > { %904 = vrot.lane.b32.xlu1 %v829_v3, %s3683_s29  ;;  %v833_v3 = vshll.u32 %v4263_v49, 16  ;;  %v1027_v43 = vrot.slane %v1025_v26, 1  ;;  %v1374_v57 = vshrl.u32 %v3031_v19, 16  ;;  %v1054_v26 = vshll.u32 %v4333_v12, 16 }
 0x105   : > { %v1366_v10 = vshll.u32 %v3030_v4, 16  ;;  %v1364_v24 = vshrl.u32 %v3030_v4, 16  ;;  %v4433_v51 = vld [vmem:[#allocation2 + $0x5c] ss:$0 sps:$4 sm:$0x11]   ;;  %vm1127_vm10 = vcmask 64512  }
 0x106   : > { %1411 = vrot.lane.b32.xlu0 %v1350_v13, %s3683_s29  ;;  %v835_v63 = vrot.slane %v833_v3, 1  ;;  %v843_v13 = vshrl.u32 %v4269_v61, 16  ;;  %v1028_v4 = vor.u32 %v1027_v43, %v1023_v42  ;;  %v4350_v42 = vld [vmem:[#allocation2 + $0x50] ss:$0 sps:$4 sm:$0x11]   ;;  %5350 = vst [vmem:[#allocation26_spill] sm:$0xff] %v4433_v51 }
 0x107   : > { %v1368_v25 = vrot.slane %v1366_v10, 1  ;;  %v680_v10 = vld [vmem:[#allocation2 + $0x4c] sm:$0xf]  ;;  %v645_v43 = vld [vmem:[#allocation2 + $0x30] sm:$0xf]  ;;  %vm1110_vm11 = vcmask 31744  }
 0x108   : > { %962 = vrot.lane.b32.xlu1 %v4229_v58, %s3682_s12  ;;  %v836_v23 = vor.u32 %v835_v63, %v831_v5  ;;  %v848_v32 = vor.u32 %v847_v14, %v843_v13  ;;  %v698_v5 = vld [vmem:[#allocation2 + $0x48] sm:$0xe]  ;;  %v1035_v14 = vshrl.u32 %v4243_v31, 16  ;;  %v727_v58 = vld [vmem:[#allocation2 + $0x24] sm:$0xe]  ;;  %vm1144_vm12 = vcmask 97280  }
 0x109   : > { %v1369_v17 = vor.u32 %v1368_v25, %v1364_v24  ;;  %v3039_v24 = vcombine.low %v698_v5, %v680_v10  ;;  %v4343_v25 = vcombine.low %v679_v36, %v680_v10  ;;  %vm1169_vm13 = vcmask 130048  }
 0x10a   : > { %1094 = vrot.lane.b32.xlu0 %v4239_v27, %s3684_s6  ;;  %v841_v39 = vsel %vm805_vm9, %v836_v23, %v4216_v59  ;;  %v853_v48 = vsel %vm805_vm9, %v848_v32, %v4235_v21  ;;  %v1378_v59 = vrot.slane %v1376_v37, 1  ;;  %v4329_v21 = vcombine.low %v677_v50, %v678_v52 }
 0x10b   : > { %v1370_v3 = vsel %vm805_vm9, %v1369_v17, %v4313_v34  ;;  %v4339_v23 = vsel %vm805_vm9, %v1028_v4, %v4260_v47  ;;  %5348 = vst [vmem:[#allocation24_spill] sm:$0xff] %v4343_v25  ;;  %v1528_v47 = vshll.u32 %v3039_v24, 16  ;;  %v667_v4 = vld [vmem:[#allocation2 + $0x48] sm:$0xe] }
 0x10c   : > { %1415 = vrot.lane.b32.xlu1 %v1360_v33, %s3683_s29  ;;  %v4308_v33 = vld [vmem:[#allocation2 + $0x44] ss:$0 sps:$4 sm:$0x11]   ;;  %5347 = vst [vmem:[#allocation23_spill] sm:$0xff] %v4329_v21  ;;  %v1379_v13 = vor.u32 %v1378_v59, %v1374_v57  ;;  %v1066_v57 = vshll.u32 %v4350_v42, 16  ;;  %v4364_v59 = vcombine.low %v645_v43, %v4266_v56  ;;  %v5286_v43 = vshrl.u32 %v4333_v12, 16 }
 0x10d   : > { %v874_v55 = vshll.u32 %v4308_v33, 16  ;;  %v1381_v56 = vshrl.u32 %v4308_v33, 16 }
 0x10e   : > { %964 = vrot.lane.b32.xlu0 %v4243_v31, %s3682_s12  ;;  %v4379_v5 = vrot.slane %v1066_v57, 1 }
 0x10f   : > { %v4331_v63 = vrot.slane %v874_v55, 1 }
 0x110   : > { %1096 = vrot.lane.b32.xlu1 %v4257_v0, %s3684_s6 }
 0x111   : > { %v1380_v32 = vsel %vm805_vm9, %v1379_v13, %v4331_v63  ;;  %v857_v13 = vshll.u32 %v4364_v59, 16 }
 0x112   : > { %1413 = vrot.lane.b32.xlu0 %v1351_v45, %s3683_s29  ;;  %v697_v45 = vld [vmem:[#allocation2 + $0x3c] sm:$0xe] }
 0x113   : > { %v3038_v2 = vcombine.low %v697_v45, %v678_v52  ;;  %v1371_v45 = vshrl.u32 %v4288_v8, 16  ;;  %v4360_v52 = vrot.slane %v1054_v26, 1  ;;  %v859_v26 = vrot.slane %v857_v13, 1 }
 0x114   : > { %1563 = vrot.lane.b32.xlu1 %v4276_v28, %s3684_s6 }
 0x115   : > { %v1518_v19 = vshll.u32 %v3038_v2, 16 }
 0x116   : > { %1417 = vrot.lane.b32.xlu0 %v1361_v16, %s3683_s29  ;;  %v1037_v16 = vshll.u32 %v4243_v31, 16 }
 0x117   : > { %v1520_v17 = vrot.slane %v1518_v19, 1  ;;  %v4388_v19 = vld [vmem:[#allocation2 + $0x50] ss:$0 sps:$4 sm:$0x11]  }
 0x118   : > { %1439 = vrot.lane.b32.xlu1 %v4232_v20, %s3682_s12  ;;  %v1039_v18 = vrot.slane %v1037_v16, 1  ;;  %v1526_v16 = vshrl.u32 %v3039_v24, 16 }
 0x11a   : > { %1567 = vrot.lane.b32.xlu0 %v4292_v9, %s3684_s6  ;;  %v1040_v37 = vor.u32 %v1039_v18, %v1035_v14  ;;  %v855_v18 = vshrl.u32 %v4364_v59, 16 }
 0x11c   : > { %1441 = vrot.lane.b32.xlu1 %v4250_v40, %s3682_s12  ;;  %v4358_v50 = vsel %vm805_vm9, %v1040_v37, %v4279_v62  ;;  %v4394_v37 = vld [vmem:[#allocation2 + $0x58] sm:$0xf] }
 0x11e   : > { %1565 = vrot.lane.b32.xlu0 %v5288_v15, %s3684_s6  ;;  %v700_v15 = vld [vmem:[#allocation2 + $0x60] sm:$0xe] }
 0x120   : > { %1569 = vrot.lane.b32.xlu1 %v5287_v29, %s3684_s6 }
 0x122   : > { %906 = vrot.lane.b32.xlu0 %v841_v39, %s3683_s29  ;;  %v1516_v39 = vshrl.u32 %v3038_v2, 16  ;;  %v1530_v2 = vrot.slane %v1528_v47, 1 }
 0x124   : > { %908 = vrot.lane.b32.xlu1 %v853_v48, %s3683_s29  ;;  %v647_v48 = vld [vmem:[#allocation2 + $0x3c] sm:$0xf]  ;;  %v1521_v55 = vor.u32 %v1520_v17, %v1516_v39  ;;  %v1531_v10 = vor.u32 %v1530_v2, %v1526_v16  ;;  %v668_v39 = vld [vmem:[#allocation2 + $0x54] sm:$0xe]  ;;  %v1049_v2 = vshll.u32 %v4329_v21, 16 }
 0x125   : > { %v4369_v36 = vcombine.low %v647_v48, %v4294_v11  ;;  %v3033_v48 = vcombine.low %v668_v39, %v4394_v37  ;;  %v699_v39 = vld [vmem:[#allocation2 + $0x54] sm:$0xe] }
 0x126   : > { %1419 = vrot.lane.b32.xlu0 %v1370_v3, %s3683_s29  ;;  %v4366_v3 = vld [vmem:[#allocation2 + $0x4c] sm:$0xf]  ;;  %v4376_v62 = vsel %vm805_vm9, %v1521_v55, %v4360_v52  ;;  %v4392_v24 = vsel %vm805_vm9, %v1531_v10, %v4379_v5  ;;  %v860_v55 = vor.u32 %v859_v26, %v855_v18  ;;  %v4408_v10 = vld [vmem:[#allocation2 + $0x5c] ss:$0 sps:$4 sm:$0x11]   ;;  %v1047_v26 = vshrl.u32 %v4329_v21, 16 }
 0x127   : > { %v3032_v14 = vcombine.low %v667_v4, %v4366_v3  ;;  %v869_v11 = vshll.u32 %v4369_v36, 16  ;;  %v867_v17 = vshrl.u32 %v4369_v36, 16  ;;  %v5289_v4 = vshrl.u32 %v4350_v42, 16 }
 0x128   : > { %966 = vrot.lane.b32.xlu1 %v4329_v21, %s3682_s12  ;;  %v1394_v29 = vshrl.u32 %v3033_v48, 16  ;;  %v703_v21 = vld [vmem:[#allocation2 + $0x1c] sm:$0xf] }
 0x129   : > { %v871_v47 = vrot.slane %v869_v11, 1  ;;  %v1384_v57 = vshrl.u32 %v3032_v14, 16  ;;  %v1396_v11 = vshll.u32 %v3033_v48, 16 }
 0x12a   : > { %1098 = vrot.lane.b32.xlu0 %v4339_v23, %s3684_s6 }
 0x12c   : > { %1423 = vrot.lane.b32.xlu1 %v1380_v32, %s3683_s29  ;;  %v1386_v32 = vshll.u32 %v3032_v14, 16  ;;  %v865_v14 = vsel %vm805_vm9, %v860_v55, %v4313_v34  ;;  %v1398_v34 = vrot.slane %v1396_v11, 1  ;;  %v1061_v55 = vshll.u32 %v4343_v25, 16  ;;  %v684_v11 = vld [vmem:[#allocation2 + $0x64] sm:$0xf] }
 0x12e   : > { %968 = vrot.lane.b32.xlu0 %v4343_v25, %s3682_s12  ;;  %v1388_v16 = vrot.slane %v1386_v32, 1  ;;  %v1051_v32 = vrot.slane %v1049_v2, 1  ;;  %v1399_v48 = vor.u32 %v1398_v34, %v1394_v29  ;;  %v4450_v34 = vld [vmem:[#allocation2 + $0x68] ss:$0 sps:$4 sm:$0x11]  }
 0x12f   : > { %5352 = vst [vmem:[#allocation28_spill] sm:$0xff] %v4450_v34 }
 0x130   : > { %1100 = vrot.lane.b32.xlu1 %v4358_v50, %s3684_s6  ;;  %v1389_v18 = vor.u32 %v1388_v16, %v1384_v57  ;;  %v1052_v2 = vor.u32 %v1051_v32, %v1047_v26  ;;  %v3041_v26 = vcombine.low %v700_v15, %v684_v11  ;;  %v1078_v32 = vshll.u32 %v4433_v51, 16  ;;  %v649_v15 = vld [vmem:[#allocation2 + $0x48] sm:$0xf] }
 0x132   : > { %1421 = vrot.lane.b32.xlu0 %v1371_v45, %s3683_s29  ;;  %v886_v45 = vshll.u32 %v4388_v19, 16 }
 0x134   : > { %1571 = vrot.lane.b32.xlu1 %v4376_v62, %s3684_s6  ;;  %v4413_v13 = vrot.slane %v886_v45, 1  ;;  %v898_v45 = vshll.u32 %v4408_v10, 16 }
 0x136   : > { %1425 = vrot.lane.b32.xlu0 %v1381_v56, %s3683_s29  ;;  %v872_v56 = vor.u32 %v871_v47, %v867_v17  ;;  %v682_v47 = vld [vmem:[#allocation2 + $0x58] sm:$0xf]  ;;  %v1390_v16 = vsel %vm805_vm9, %v1389_v18, %v4413_v13  ;;  %v4439_v18 = vsel %vm805_vm9, %v1052_v2, %v4360_v52  ;;  %v1548_v52 = vshll.u32 %v3041_v26, 16 }
 0x137   : > { %v3040_v57 = vcombine.low %v699_v39, %v682_v47  ;;  %v1063_v39 = vrot.slane %v1061_v55, 1  ;;  %v1080_v2 = vrot.slane %v1078_v32, 1  ;;  %v1401_v32 = vshrl.u32 %v4408_v10, 16 }
 0x138   : > { %1443 = vrot.lane.b32.xlu1 %v4333_v12, %s3682_s12  ;;  %v877_v17 = vsel %vm805_vm9, %v872_v56, %v4331_v63  ;;  %v4431_v63 = vrot.slane %v898_v45, 1  ;;  %v683_v56 = vld [vmem:[#allocation2 + $0x60] sm:$0xf] }
 0x139   : > { %v1538_v60 = vshll.u32 %v3040_v57, 16 }
 0x13a   : > { %1575 = vrot.lane.b32.xlu0 %v4392_v24, %s3684_s6  ;;  %v1400_v29 = vsel %vm805_vm9, %v1399_v48, %v4431_v63  ;;  %v1090_v48 = vshll.u32 %v4450_v34, 16 }
 0x13b   : > { %v1540_v45 = vrot.slane %v1538_v60, 1  ;;  %v651_v60 = vld [vmem:[#allocation2 + $0x54] sm:$0xf] }
 0x13c   : > { %1445 = vrot.lane.b32.xlu1 %v4350_v42, %s3682_s12 }
 0x13e   : > { %1573 = vrot.lane.b32.xlu0 %v5286_v43, %s3684_s6  ;;  %v681_v43 = vld [vmem:[#allocation2 + $0x54] sm:$0xf] }
 0x140   : > { %1577 = vrot.lane.b32.xlu1 %v5289_v4, %s3684_s6  ;;  %v4429_v4 = vcombine.low %v681_v43, %v682_v47  ;;  %v4443_v43 = vcombine.low %v683_v56, %v684_v11  ;;  %v1536_v47 = vshrl.u32 %v3040_v57, 16  ;;  %v4461_v57 = vcombine.low %v649_v15, %v4366_v3 }
 0x141   : > { %v1546_v11 = vshrl.u32 %v3041_v26, 16  ;;  %v4474_v3 = vrot.slane %v1090_v48, 1  ;;  %v5298_v15 = vshrl.u32 %v4433_v51, 16 }
 0x142   : > { %910 = vrot.lane.b32.xlu0 %v865_v14, %s3683_s29  ;;  %5349 = vst [vmem:[#allocation25_spill] sm:$0xff] %v4429_v4  ;;  %v1059_v14 = vshrl.u32 %v4343_v25, 16  ;;  %5351 = vst [vmem:[#allocation27_spill] sm:$0xff] %v4443_v43  ;;  %v1541_v56 = vor.u32 %v1540_v45, %v1536_v47  ;;  %v879_v47 = vshrl.u32 %v4461_v57, 16 }
 0x144   : > { %912 = vrot.lane.b32.xlu1 %v877_v17, %s3683_s29  ;;  %v1064_v17 = vor.u32 %v1063_v39, %v1059_v14  ;;  %v1550_v14 = vrot.slane %v1548_v52, 1  ;;  %v4467_v39 = vcombine.low %v651_v60, %v4394_v37  ;;  %v1073_v60 = vshll.u32 %v4429_v4, 16 }
 0x146   : > { %1427 = vrot.lane.b32.xlu0 %v1390_v16, %s3683_s29  ;;  %v4457_v55 = vsel %vm805_vm9, %v1064_v17, %v4379_v5  ;;  %v1391_v16 = vshrl.u32 %v4388_v19, 16  ;;  %v4471_v5 = vsel %vm805_vm9, %v1541_v56, %v1080_v2  ;;  %v881_v17 = vshll.u32 %v4461_v57, 16 }
 0x147   : > { %v893_v37 = vshll.u32 %v4467_v39, 16  ;;  %v1075_v25 = vrot.slane %v1073_v60, 1  ;;  %v702_v60 = vld [vmem:[#allocation2 + $0x18] sm:$0xf] }
 0x148   : > { %970 = vrot.lane.b32.xlu1 %v4429_v4, %s3682_s12  ;;  %v883_v45 = vrot.slane %v881_v17, 1  ;;  %v1071_v17 = vshrl.u32 %v4429_v4, 16 }
 0x149   : > { %v895_v56 = vrot.slane %v893_v37, 1 }
 0x14a   : > { %1102 = vrot.lane.b32.xlu0 %v4439_v18, %s3684_s6  ;;  %v884_v48 = vor.u32 %v883_v45, %v879_v47  ;;  %v726_v47 = vld [vmem:[#allocation2 + $0x18] sm:$0xe]  ;;  %v1085_v45 = vshll.u32 %v4443_v43, 16 }
 0x14c   : > { %1431 = vrot.lane.b32.xlu1 %v1400_v29, %s3683_s29  ;;  %v1551_v29 = vor.u32 %v1550_v14, %v1546_v11  ;;  %v5303_v14 = vshrl.u32 %v4450_v34, 16  ;;  %v889_v37 = vsel %vm805_vm9, %v884_v48, %v4413_v13  ;;  %v1083_v13 = vshrl.u32 %v4443_v43, 16 }
 0x14d   : > { %v1087_v48 = vrot.slane %v1085_v45, 1 }
 0x14e   : > { %972 = vrot.lane.b32.xlu0 %v4443_v43, %s3682_s12  ;;  %v4483_v26 = vsel %vm805_vm9, %v1551_v29, %v4474_v3 }
 0x150   : > { %1104 = vrot.lane.b32.xlu1 %v4457_v55, %s3684_s6 }
 0x152   : > { %1429 = vrot.lane.b32.xlu0 %v1391_v16, %s3683_s29  ;;  %v891_v16 = vshrl.u32 %v4467_v39, 16 }
 0x154   : > { %1579 = vrot.lane.b32.xlu1 %v4471_v5, %s3684_s6  ;;  %v896_v29 = vor.u32 %v895_v56, %v891_v16  ;;  %v1076_v56 = vor.u32 %v1075_v25, %v1071_v17 }
 0x156   : > { %1433 = vrot.lane.b32.xlu0 %v1401_v32, %s3683_s29  ;;  %v901_v16 = vsel %vm805_vm9, %v896_v29, %v4431_v63  ;;  %v4522_v63 = vsel %vm805_vm9, %v1076_v56, %v1080_v2  ;;  %v4524_v29 = vcombine.low %v702_v60, %v703_v21 }
 0x157   : > { %5353 = vst [vmem:[#allocation29_spill] sm:$0xff] %v4522_v63 }
 0x158   : > { %1447 = vrot.lane.b32.xlu1 %v4433_v51, %s3682_s12 }
 0x159   : > { %v4486_v52 = vpop.permute.xlu0 %958 }
 0x15a   : > { %1583 = vrot.lane.b32.xlu0 %v4483_v26, %s3684_s6  ;;  %v4495_v11 = vpop.permute.xlu1 %960 }
 0x15c   : > { %1449 = vrot.lane.b32.xlu1 %v4450_v34, %s3682_s12 }
 0x15d   : > { %v1406_v32 = vpop.permute.xlu0 %1405 }
 0x15e   : > { %1581 = vrot.lane.b32.xlu0 %v5298_v15, %s3684_s6  ;;  %v3108_v15 = vcombine.low %v726_v47, %v703_v21  ;;  %v4526_v47 = vld [vmem:[#allocation2 + $0x20] ss:$0 sps:$4 sm:$0x11]   ;;  %v704_v21 = vld [vmem:[#allocation2 + $0x24] sm:$0xf] }
 0x160   : > { %1585 = vrot.lane.b32.xlu1 %v5303_v14, %s3684_s6  ;;  %v2372_v17 = vshll.u32 %v3108_v15, 16  ;;  %v2370_v2 = vshrl.u32 %v3108_v15, 16 }
 0x162   : > { %914 = vrot.lane.b32.xlu0 %v889_v37, %s3683_s29  ;;  %v1408_v31 = vpop.permute.xlu1 %1407  ;;  %v705_v37 = vld [vmem:[#allocation2 + $0x28] sm:$0xf]  ;;  %v2374_v56 = vrot.slane %v2372_v17, 1 }
 0x163   : > { %v3109_v43 = vcombine.low %v727_v58, %v705_v37  ;;  %v1592_v44 = vsel %vm1110_vm11, %v4169_v22, %v1408_v31  ;;  %v4540_v31 = vld [vmem:[#allocation2 + $0x2c] ss:$0 sps:$4 sm:$0x11]   ;;  %v4547_v41 = vcombine.low %v704_v21, %v705_v37 }
 0x164   : > { %v1404_v4 = vpop.permute.xlu0 %1403  ;;  %916 = vrot.lane.b32.xlu1 %v901_v16, %s3683_s29  ;;  %v2018_v51 = vshll.u32 %v4540_v31, 16 }
 0x165   : > { %v1588_v14 = vsel %vm1110_vm11, %v4156_v6, %v1404_v4  ;;  %v1088_v4 = vor.u32 %v1087_v48, %v1083_v13  ;;  %v2382_v13 = vshll.u32 %v3109_v43, 16 }
 0x166   : > { %2297 = vrot.lane.b32.xlu0 %v4181_v30, %s3683_s29  ;;  %v1619_v25 = vsel %vm1127_vm10, %v1588_v14, %v4486_v52  ;;  %v1556_v45 = vpop.permute.xlu1 %1555  ;;  %v2006_v14 = vshll.u32 %v4526_v47, 16 }
 0x167   : > { %v1644_v30 = vsel %vm1144_vm12, %v1619_v25, %v1556_v45  ;;  %v4538_v58 = vsel %vm805_vm9, %v1088_v4, %v4474_v3  ;;  %v1622_v25 = vsel %vm1127_vm10, %v1592_v44, %v4495_v11  ;;  %v2380_v3 = vshrl.u32 %v3109_v43, 16 }
 0x168   : > { %v1410_v16 = vpop.permute.xlu0 %1409  ;;  %1106 = vrot.lane.b32.xlu1 %v4522_v63, %s3684_s6  ;;  %v1677_v48 = vshll.u32 %v1644_v30, 16  ;;  %v4551_v17 = vrot.slane %v2006_v14, 1  ;;  %v2375_v4 = vor.u32 %v2374_v56, %v2370_v2  ;;  %v1590_v63 = vsel %vm1110_vm11, %v4138_v54, %v1406_v32 }
 0x169   : > { %v1675_v43 = vshrl.u32 %v1644_v30, 16  ;;  %v1594_v2 = vsel %vm1110_vm11, %v4145_v46, %v1410_v16  ;;  %v5354_v54 = vshrl.u32 %v4154_v1, 16  ;;  %v3479_v16 = vld [vmem:[#allocation6 + $0x18] sm:$0xff]  }
 0x16a   : > { %1958 = vrot.lane.b32.xlu0 %v4524_v29, %s3682_s12  ;;  %v1436_v60 = vpop.permute.xlu1 %1435  ;;  %v2376_v32 = vsel %vm805_vm9, %v2375_v4, %v4551_v17  ;;  %3244 = vmatprep.subr.bf16.mxu1 %v3479_v16 }
 0x16c   : > { %v1560_v15 = vpop.permute.xlu0 %1559  ;;  %2301 = vrot.lane.b32.xlu1 %v4194_v38, %s3683_s29  ;;  %v1621_v38 = vsel %vm1127_vm10, %v1590_v63, %v1436_v60 }
 0x16d   : > { %v1648_v45 = vsel %vm1144_vm12, %v1622_v25, %v1560_v15  ;;  %v2384_v25 = vrot.slane %v2382_v13, 1  ;;  %v1679_v15 = vrot.slane %v1677_v48, 1  ;;  %v4568_v13 = vrot.slane %v2018_v51, 1 }
 0x16e   : > { %1108 = vrot.lane.b32.xlu0 %v4538_v58, %s3684_s6  ;;  %v1687_v34 = vshll.u32 %v1648_v45, 16  ;;  %v1438_v44 = vpop.permute.xlu1 %1437 }
 0x16f   : > { %v1624_v63 = vsel %vm1127_vm10, %v1594_v2, %v1438_v44  ;;  %v2385_v48 = vor.u32 %v2384_v25, %v2380_v3  ;;  %v2001_v2 = vshll.u32 %v4524_v29, 16 }
 0x170   : > { %v1558_v37 = vpop.permute.xlu0 %1557  ;;  %1960 = vrot.lane.b32.xlu1 %v4547_v41, %s3682_s12  ;;  %v1689_v56 = vrot.slane %v1687_v34, 1  ;;  %v5355_v34 = vshrl.u32 %v4158_v7, 16 }
 0x171   : > { %v1646_v21 = vsel %vm1144_vm12, %v1621_v38, %v1558_v37  ;;  %v1680_v38 = vor.u32 %v1679_v15, %v1675_v43  ;;  %v2386_v25 = vsel %vm805_vm9, %v2385_v48, %v4568_v13  ;;  %v2377_v43 = vshrl.u32 %v4526_v47, 16 }
 0x172   : > { %v1681_v14 = vshll.u32 %v1646_v21, 16  ;;  %2299 = vrot.lane.b32.xlu0 %v5354_v54, %s3683_s29  ;;  %v1562_v60 = vpop.permute.xlu1 %1561  ;;  %v1685_v21 = vshrl.u32 %v1648_v45, 16  ;;  %v2003_v48 = vrot.slane %v2001_v2, 1 }
 0x173   : > { %v1650_v37 = vsel %vm1144_vm12, %v1624_v63, %v1562_v60  ;;  %v728_v63 = vld [vmem:[#allocation2 + $0x30] sm:$0xe]  ;;  %v1999_v60 = vshrl.u32 %v4524_v29, 16 }
 0x174   : > { %v1683_v30 = vrot.slane %v1681_v14, 1  ;;  %v903_v46 = vpop.permute.xlu0 %902  ;;  %v1691_v1 = vshll.u32 %v1650_v37, 16  ;;  %2449 = vrot.lane.b32.xlu1 %v2376_v32, %s3684_s6  ;;  %v1690_v51 = vor.u32 %v1689_v56, %v1685_v21  ;;  %v2387_v56 = vshrl.u32 %v4540_v31, 16  ;;  %v707_v37 = vld [vmem:[#allocation2 + $0x34] sm:$0xf] }
 0x175   : > { %v1112_v45 = vsel %vm1110_vm11, %v4156_v6, %v903_v46  ;;  %v706_v46 = vld [vmem:[#allocation2 + $0x30] sm:$0xf] }
 0x176   : > { %2303 = vrot.lane.b32.xlu0 %v5355_v34, %s3683_s29  ;;  %v1684_v4 = vsel %vm805_vm9, %v1680_v38, %v1683_v30  ;;  %v1693_v3 = vrot.slane %v1691_v1, 1  ;;  %v905_v44 = vpop.permute.xlu1 %904  ;;  %v1129_v6 = vsel %vm1127_vm10, %v1112_v45, %v4486_v52  ;;  %v3480_v38 = vld [vmem:[#allocation6 + $0x10] sm:$0xff]   ;;  %v2004_v1 = vor.u32 %v2003_v48, %v1999_v60  ;;  %v4620_v45 = vld [vmem:[#allocation2 + $0x38] ss:$0 sps:$4 sm:$0x11]  }
 0x177   : > { %3210 = vmatprep.mubr.msk.bf16.mxu1 %vm1169_vm13, %v1684_v4  ;;  %v1114_v52 = vsel %vm1110_vm11, %v4169_v22, %v905_v44  ;;  %3226 = vmatprep.subr.bf16.mxu0 %v3480_v38  ;;  %v729_v4 = vld [vmem:[#allocation2 + $0x3c] sm:$0xe]  ;;  %v2011_v44 = vshrl.u32 %v4547_v41, 16 }
 0x178   : > { %v1412_v15 = vpop.permute.xlu0 %1411  ;;  %2329 = vrot.lane.b32.xlu1 %v4526_v47, %s3682_s12  ;;  %v1694_v7 = vsel %vm805_vm9, %v1690_v51, %v1693_v3  ;;  %v1131_v29 = vsel %vm1127_vm10, %v1114_v52, %v4495_v11  ;;  %v709_v3 = vld [vmem:[#allocation2 + $0x40] sm:$0xf] }
 0x179   : > { %3211 = vmatmul.mubr.msk.bf16.vlgmr.msra.gmra.mrb[0].mxu1 %vm1169_vm13, %v1694_v7  ;;  %v1596_v51 = vsel %vm1110_vm11, %v4263_v49, %v1412_v15  ;;  %v2009_v15 = vsel %vm805_vm9, %v2004_v1, %v4551_v17 }
 0x17a   : > { %2453 = vrot.lane.b32.xlu0 %v2386_v25, %s3684_s6  ;;  %v4588_v14 = vpop.permute.xlu1 %962  ;;  %3245 = vmatpush3.bf16.msra.mxu1 %v3479_v16  ;;  %v3110_v16 = vcombine.low %v728_v63, %v707_v37 }
 0x17b   : > { %v1625_v2 = vsel %vm1127_vm10, %v1596_v51, %v4588_v14 }
 0x17c   : > { %v1095_v54 = vpop.permute.xlu0 %1094  ;;  %2331 = vrot.lane.b32.xlu1 %v4540_v31, %s3682_s12  ;;  %v2013_v31 = vshll.u32 %v4547_v41, 16  ;;  %v2392_v11 = vshll.u32 %v3110_v16, 16  ;;  %v2390_v41 = vshrl.u32 %v3110_v16, 16 }
 0x17d   : > { %v1146_v32 = vsel %vm1144_vm12, %v1129_v6, %v1095_v54 }
 0x17e   : > { %2451 = vrot.lane.b32.xlu0 %v2377_v43, %s3684_s6  ;;  %3192 = vmatprep.mubr.msk.bf16.mxu0 %vm1169_vm13, %v1146_v32  ;;  %v1416_v47 = vpop.permute.xlu1 %1415  ;;  %v2015_v25 = vrot.slane %v2013_v31, 1  ;;  %v3111_v43 = vcombine.low %v729_v4, %v709_v3  ;;  %v2394_v63 = vrot.slane %v2392_v11, 1 }
 0x180   : > { %v4601_v30 = vpop.permute.xlu0 %964  ;;  %2455 = vrot.lane.b32.xlu1 %v2387_v56, %s3684_s6  ;;  %v2016_v17 = vor.u32 %v2015_v25, %v2011_v44  ;;  %v2030_v56 = vshll.u32 %v4620_v45, 16  ;;  %v2402_v48 = vshll.u32 %v3111_v43, 16 }
 0x182   : > { %1902 = vrot.lane.b32.xlu0 %v4239_v27, %s3683_s29  ;;  %v1097_v21 = vpop.permute.xlu1 %1096  ;;  %v4615_v27 = vcombine.low %v706_v46, %v707_v37  ;;  %v2400_v46 = vshrl.u32 %v3111_v43, 16  ;;  %v2021_v16 = vsel %vm805_vm9, %v2016_v17, %v4568_v13 }
 0x183   : > { %v1148_v22 = vsel %vm1144_vm12, %v1131_v29, %v1097_v21  ;;  %v4646_v29 = vrot.slane %v2030_v56, 1  ;;  %v2395_v21 = vor.u32 %v2394_v63, %v2390_v41 }
 0x184   : > { %v1414_v34 = vpop.permute.xlu0 %1413  ;;  %1904 = vrot.lane.b32.xlu1 %v4257_v0, %s3683_s29  ;;  %3193 = vmatmul.mubr.msk.bf16.vlgmr.msra.gmra.mrb[0].mxu0 %vm1169_vm13, %v1148_v22  ;;  %v708_v0 = vld [vmem:[#allocation2 + $0x3c] sm:$0xf] }
 0x185   : > { %3227 = vmatpush3.bf16.msra.mxu0 %v3480_v38  ;;  %v4632_v32 = vcombine.low %v708_v0, %v709_v3  ;;  %v4635_v38 = vld [vmem:[#allocation2 + $0x44] ss:$0 sps:$4 sm:$0x11]   ;;  %v1598_v1 = vsel %vm1110_vm11, %v4188_v35, %v1414_v34  ;;  %v2404_v3 = vrot.slane %v2402_v48, 1  ;;  %v5356_v35 = vshrl.u32 %v4232_v20, 16 }
 0x186   : > { %2305 = vrot.lane.b32.xlu0 %v4276_v28, %s3683_s29  ;;  %v1564_v7 = vpop.permute.xlu1 %1563  ;;  %v1600_v28 = vsel %vm1110_vm11, %v4269_v61, %v1416_v47  ;;  %v2042_v51 = vshll.u32 %v4635_v38, 16  ;;  %v2396_v34 = vsel %vm805_vm9, %v2395_v21, %v4646_v29  ;;  %v5357_v20 = vshrl.u32 %v4250_v40, 16 }
 0x187   : > { %v1652_v6 = vsel %vm1144_vm12, %v1625_v2, %v1564_v7  ;;  %v1628_v47 = vsel %vm1127_vm10, %v1600_v28, %v4601_v30  ;;  %v2405_v41 = vor.u32 %v2404_v3, %v2400_v46  ;;  %v2025_v21 = vshll.u32 %v4615_v27, 16  ;;  %v730_v3 = vld [vmem:[#allocation2 + $0x48] sm:$0xe] }
 0x188   : > { %v1418_v54 = vpop.permute.xlu0 %1417  ;;  %1962 = vrot.lane.b32.xlu1 %v4615_v27, %s3682_s12  ;;  %v1697_v52 = vshll.u32 %v1652_v6, 16  ;;  %v1695_v13 = vshrl.u32 %v1652_v6, 16  ;;  %v4662_v28 = vrot.slane %v2042_v51, 1  ;;  %v2407_v51 = vshrl.u32 %v4635_v38, 16 }
 0x189   : > { %v1602_v7 = vsel %vm1110_vm11, %v4208_v53, %v1418_v54 }
 0x18a   : > { %2094 = vrot.lane.b32.xlu0 %v2009_v15, %s3684_s6  ;;  %v1440_v60 = vpop.permute.xlu1 %1439  ;;  %v1699_v11 = vrot.slane %v1697_v52, 1 }
 0x18c   : > { %v1568_v37 = vpop.permute.xlu0 %1567  ;;  %2309 = vrot.lane.b32.xlu1 %v4292_v9, %s3683_s29  ;;  %v1627_v9 = vsel %vm1127_vm10, %v1598_v1, %v1440_v60  ;;  %v1700_v17 = vor.u32 %v1699_v11, %v1695_v13  ;;  %v2023_v11 = vshrl.u32 %v4615_v27, 16  ;;  %v2037_v13 = vshll.u32 %v4632_v32, 16 }
 0x18d   : > { %v1656_v31 = vsel %vm1144_vm12, %v1628_v47, %v1568_v37  ;;  %v2406_v37 = vsel %vm805_vm9, %v2405_v41, %v4662_v28  ;;  %v713_v41 = vld [vmem:[#allocation2 + $0x58] sm:$0xf] }
 0x18e   : > { %1964 = vrot.lane.b32.xlu0 %v4632_v32, %s3682_s12  ;;  %v1707_v22 = vshll.u32 %v1656_v31, 16  ;;  %v1442_v4 = vpop.permute.xlu1 %1441  ;;  %v1705_v54 = vshrl.u32 %v1656_v31, 16 }
 0x18f   : > { %v1630_v43 = vsel %vm1127_vm10, %v1602_v7, %v1442_v4 }
 0x190   : > { %v1566_v44 = vpop.permute.xlu0 %1565  ;;  %2096 = vrot.lane.b32.xlu1 %v2021_v16, %s3684_s6  ;;  %v1709_v0 = vrot.slane %v1707_v22, 1  ;;  %v2397_v16 = vshrl.u32 %v4620_v45, 16 }
 0x191   : > { %v1654_v25 = vsel %vm1144_vm12, %v1627_v9, %v1566_v44  ;;  %v2027_v9 = vrot.slane %v2025_v21, 1 }
 0x192   : > { %v1701_v15 = vshll.u32 %v1654_v25, 16  ;;  %2307 = vrot.lane.b32.xlu0 %v5356_v35, %s3683_s29  ;;  %v1570_v2 = vpop.permute.xlu1 %1569  ;;  %v1710_v48 = vor.u32 %v1709_v0, %v1705_v54  ;;  %v711_v25 = vld [vmem:[#allocation2 + $0x4c] sm:$0xf]  ;;  %v731_v0 = vld [vmem:[#allocation2 + $0x54] sm:$0xe] }
 0x193   : > { %v1658_v56 = vsel %vm1144_vm12, %v1630_v43, %v1570_v2  ;;  %v3112_v7 = vcombine.low %v730_v3, %v711_v25  ;;  %v2028_v35 = vor.u32 %v2027_v9, %v2023_v11  ;;  %v712_v2 = vld [vmem:[#allocation2 + $0x54] sm:$0xf] }
 0x194   : > { %v1703_v6 = vrot.slane %v1701_v15, 1  ;;  %v907_v53 = vpop.permute.xlu0 %906  ;;  %v1711_v63 = vshll.u32 %v1658_v56, 16  ;;  %2457 = vrot.lane.b32.xlu1 %v2396_v34, %s3684_s6  ;;  %v4714_v56 = vld [vmem:[#allocation2 + $0x50] ss:$0 sps:$4 sm:$0x11]  }
 0x195   : > { %v1116_v31 = vsel %vm1110_vm11, %v4263_v49, %v907_v53  ;;  %v2033_v54 = vsel %vm805_vm9, %v2028_v35, %v4646_v29 }
 0x196   : > { %2311 = vrot.lane.b32.xlu0 %v5357_v20, %s3683_s29  ;;  %v1704_v60 = vsel %vm805_vm9, %v1700_v17, %v1703_v6  ;;  %v1713_v47 = vrot.slane %v1711_v63, 1  ;;  %v909_v52 = vpop.permute.xlu1 %908  ;;  %v1133_v22 = vsel %vm1127_vm10, %v1116_v31, %v4588_v14  ;;  %v2035_v17 = vshrl.u32 %v4632_v32, 16 }
 0x197   : > { %3214 = vmatprep.mubr.msk.bf16.mxu1 %vm1169_vm13, %v1704_v60  ;;  %v1118_v14 = vsel %vm1110_vm11, %v4269_v61, %v909_v52  ;;  %v2412_v6 = vshll.u32 %v3112_v7, 16  ;;  %v2054_v52 = vshll.u32 %v4714_v56, 16 }
 0x198   : > { %v1420_v46 = vpop.permute.xlu0 %1419  ;;  %2333 = vrot.lane.b32.xlu1 %v4620_v45, %s3682_s12  ;;  %v1714_v40 = vsel %vm805_vm9, %v1710_v48, %v1713_v47  ;;  %v1135_v27 = vsel %vm1127_vm10, %v1118_v14, %v4601_v30  ;;  %v2039_v30 = vrot.slane %v2037_v13, 1  ;;  %v2410_v48 = vshrl.u32 %v3112_v7, 16 }
 0x199   : > { %3215 = vmatmul.mubr.msk.bf16.gmra.mrb[4].mxu1 %vm1169_vm13, %v1714_v40  ;;  %v1604_v43 = vsel %vm1110_vm11, %v4364_v59, %v1420_v46  ;;  %v2414_v47 = vrot.slane %v2412_v6, 1 }
 0x19a   : > { %2461 = vrot.lane.b32.xlu0 %v2406_v37, %s3684_s6  ;;  %v4682_v1 = vpop.permute.xlu1 %966  ;;  %v2040_v29 = vor.u32 %v2039_v30, %v2035_v17  ;;  %v4729_v37 = vld [vmem:[#allocation2 + $0x5c] ss:$0 sps:$4 sm:$0x11]  }
 0x19b   : > { %v1631_v63 = vsel %vm1127_vm10, %v1604_v43, %v4682_v1 }
 0x19c   : > { %v1099_v4 = vpop.permute.xlu0 %1098  ;;  %2335 = vrot.lane.b32.xlu1 %v4635_v38, %s3682_s12  ;;  %v710_v38 = vld [vmem:[#allocation2 + $0x48] sm:$0xf] }
 0x19d   : > { %v1150_v49 = vsel %vm1144_vm12, %v1133_v22, %v1099_v4  ;;  %v2045_v4 = vsel %vm805_vm9, %v2040_v29, %v4662_v28 }
 0x19e   : > { %2459 = vrot.lane.b32.xlu0 %v2397_v16, %s3684_s6  ;;  %3196 = vmatprep.mubr.msk.bf16.mxu0 %vm1169_vm13, %v1150_v49  ;;  %v1424_v45 = vpop.permute.xlu1 %1423  ;;  %v4740_v49 = vrot.slane %v2054_v52, 1 }
 0x19f   : > { %v1608_v60 = vsel %vm1110_vm11, %v4369_v36, %v1424_v45  ;;  %v2066_v45 = vshll.u32 %v4729_v37, 16 }
 0x1a0   : > { %v4695_v44 = vpop.permute.xlu0 %968  ;;  %2463 = vrot.lane.b32.xlu1 %v2407_v51, %s3684_s6  ;;  %v2415_v51 = vor.u32 %v2414_v47, %v2410_v48  ;;  %v2417_v47 = vshrl.u32 %v4714_v56, 16 }
 0x1a1   : > { %v1634_v40 = vsel %vm1127_vm10, %v1608_v60, %v4695_v44  ;;  %v4756_v43 = vrot.slane %v2066_v45, 1 }
 0x1a2   : > { %1906 = vrot.lane.b32.xlu0 %v4339_v23, %s3683_s29  ;;  %v1101_v15 = vpop.permute.xlu1 %1100  ;;  %v4709_v23 = vcombine.low %v710_v38, %v711_v25  ;;  %v2416_v35 = vsel %vm805_vm9, %v2415_v51, %v4740_v49  ;;  %v715_v51 = vld [vmem:[#allocation2 + $0x64] sm:$0xf] }
 0x1a3   : > { %v1152_v34 = vsel %vm1144_vm12, %v1135_v27, %v1101_v15 }
 0x1a4   : > { %v1422_v61 = vpop.permute.xlu0 %1421  ;;  %1908 = vrot.lane.b32.xlu1 %v4358_v50, %s3683_s29  ;;  %3197 = vmatmul.mubr.msk.bf16.gmra.mrb[4].mxu0 %vm1169_vm13, %v1152_v34  ;;  %v3113_v50 = vcombine.low %v731_v0, %v713_v41  ;;  %v2049_v29 = vshll.u32 %v4709_v23, 16 }
 0x1a5   : > { %v1606_v3 = vsel %vm1110_vm11, %v4288_v8, %v1422_v61  ;;  %v5358_v8 = vshrl.u32 %v4333_v12, 16  ;;  %v5359_v12 = vshrl.u32 %v4350_v42, 16 }
 0x1a6   : > { %2313 = vrot.lane.b32.xlu0 %v4376_v62, %s3683_s29  ;;  %v1572_v53 = vpop.permute.xlu1 %1571  ;;  %v4725_v62 = vcombine.low %v712_v2, %v713_v41  ;;  %v2422_v31 = vshll.u32 %v3113_v50, 16  ;;  %v2420_v14 = vshrl.u32 %v3113_v50, 16 }
 0x1a7   : > { %v1660_v32 = vsel %vm1144_vm12, %v1631_v63, %v1572_v53 }
 0x1a8   : > { %v1426_v20 = vpop.permute.xlu0 %1425  ;;  %1966 = vrot.lane.b32.xlu1 %v4709_v23, %s3682_s12  ;;  %v1717_v16 = vshll.u32 %v1660_v32, 16  ;;  %v2424_v25 = vrot.slane %v2422_v31, 1  ;;  %v1715_v28 = vshrl.u32 %v1660_v32, 16 }
 0x1a9   : > { %v1610_v15 = vsel %vm1110_vm11, %v4308_v33, %v1426_v20 }
 0x1aa   : > { %2098 = vrot.lane.b32.xlu0 %v2033_v54, %s3684_s6  ;;  %v1444_v46 = vpop.permute.xlu1 %1443  ;;  %v1719_v13 = vrot.slane %v1717_v16, 1  ;;  %v2425_v2 = vor.u32 %v2424_v25, %v2420_v14  ;;  %v2051_v16 = vrot.slane %v2049_v29, 1  ;;  %v733_v25 = vld [vmem:[#allocation2 + $0x6c] sm:$0xe] }
 0x1ac   : > { %v1576_v21 = vpop.permute.xlu0 %1575  ;;  %2317 = vrot.lane.b32.xlu1 %v4392_v24, %s3683_s29  ;;  %v1633_v24 = vsel %vm1127_vm10, %v1606_v3, %v1444_v46  ;;  %v1720_v41 = vor.u32 %v1719_v13, %v1715_v28  ;;  %v2426_v60 = vsel %vm805_vm9, %v2425_v2, %v4756_v43  ;;  %v2061_v3 = vshll.u32 %v4725_v62, 16  ;;  %v4808_v28 = vld [vmem:[#allocation2 + $0x68] ss:$0 sps:$4 sm:$0x11]  }
 0x1ad   : > { %v1664_v22 = vsel %vm1144_vm12, %v1634_v40, %v1576_v21  ;;  %v2427_v40 = vshrl.u32 %v4729_v37, 16 }
 0x1ae   : > { %1968 = vrot.lane.b32.xlu0 %v4725_v62, %s3682_s12  ;;  %v1727_v11 = vshll.u32 %v1664_v22, 16  ;;  %v1446_v9 = vpop.permute.xlu1 %1445  ;;  %v1725_v6 = vshrl.u32 %v1664_v22, 16  ;;  %v732_v22 = vld [vmem:[#allocation2 + $0x60] sm:$0xe] }
 0x1af   : > { %v1636_v61 = vsel %vm1127_vm10, %v1610_v15, %v1446_v9  ;;  %v3114_v45 = vcombine.low %v732_v22, %v715_v51 }
 0x1b0   : > { %v1574_v38 = vpop.permute.xlu0 %1573  ;;  %2100 = vrot.lane.b32.xlu1 %v2045_v4, %s3684_s6  ;;  %v1729_v34 = vrot.slane %v1727_v11, 1 }
 0x1b1   : > { %v1662_v7 = vsel %vm1144_vm12, %v1633_v24, %v1574_v38  ;;  %v716_v24 = vld [vmem:[#allocation2 + $0x6c] sm:$0xf]  ;;  %v717_v38 = vld [vmem:[#allocation2 + $0x70] sm:$0xf]  ;;  %v2432_v15 = vshll.u32 %v3114_v45, 16  ;;  %v2430_v2 = vshrl.u32 %v3114_v45, 16 }
 0x1b2   : > { %v1721_v27 = vshll.u32 %v1662_v7, 16  ;;  %2315 = vrot.lane.b32.xlu0 %v5358_v8, %s3683_s29  ;;  %v1578_v0 = vpop.permute.xlu1 %1577  ;;  %v1730_v50 = vor.u32 %v1729_v34, %v1725_v6  ;;  %v2063_v7 = vrot.slane %v2061_v3, 1 }
 0x1b3   : > { %v1666_v30 = vsel %vm1144_vm12, %v1636_v61, %v1578_v0 }
 0x1b4   : > { %v1723_v17 = vrot.slane %v1721_v27, 1  ;;  %v911_v33 = vpop.permute.xlu0 %910  ;;  %v1731_v53 = vshll.u32 %v1666_v30, 16  ;;  %2465 = vrot.lane.b32.xlu1 %v2416_v35, %s3684_s6 }
 0x1b5   : > { %v1120_v48 = vsel %vm1110_vm11, %v4364_v59, %v911_v33 }
 0x1b6   : > { %2319 = vrot.lane.b32.xlu0 %v5359_v12, %s3683_s29  ;;  %v1724_v54 = vsel %vm805_vm9, %v1720_v41, %v1723_v17  ;;  %v1733_v63 = vrot.slane %v1731_v53, 1  ;;  %v913_v20 = vpop.permute.xlu1 %912  ;;  %v1137_v46 = vsel %vm1127_vm10, %v1120_v48, %v4682_v1  ;;  %v2434_v41 = vrot.slane %v2432_v15, 1  ;;  %v4823_v17 = vld [vmem:[#allocation2 + $0x74] ss:$0 sps:$4 sm:$0x11]  }
 0x1b7   : > { %3218 = vmatprep.mubr.msk.bf16.mxu1 %vm1169_vm13, %v1724_v54  ;;  %v1122_v1 = vsel %vm1110_vm11, %v4369_v36, %v913_v20 }
 0x1b8   : > { %v1428_v32 = vpop.permute.xlu0 %1427  ;;  %2337 = vrot.lane.b32.xlu1 %v4714_v56, %s3682_s12  ;;  %v1734_v42 = vsel %vm805_vm9, %v1730_v50, %v1733_v63  ;;  %v2047_v56 = vshrl.u32 %v4709_v23, 16  ;;  %v1139_v23 = vsel %vm1127_vm10, %v1122_v1, %v4695_v44  ;;  %v2059_v44 = vshrl.u32 %v4725_v62, 16 }
 0x1b9   : > { %3219 = vmatmul.mubr.msk.bf16.gmra.mrb[8].mxu1 %vm1169_vm13, %v1734_v42  ;;  %v1612_v13 = vsel %vm1110_vm11, %v4461_v57, %v1428_v32  ;;  %v4819_v62 = vcombine.low %v716_v24, %v717_v38  ;;  %v2435_v20 = vor.u32 %v2434_v41, %v2430_v2 }
 0x1ba   : > { %2469 = vrot.lane.b32.xlu0 %v2426_v60, %s3684_s6  ;;  %v4776_v52 = vpop.permute.xlu1 %970  ;;  %v2052_v9 = vor.u32 %v2051_v16, %v2047_v56  ;;  %v2064_v0 = vor.u32 %v2063_v7, %v2059_v44  ;;  %v2090_v60 = vshll.u32 %v4823_v17, 16  ;;  %v5360_v16 = vld [vmem:[#allocation26_spill] sm:$0xff] }
 0x1bb   : > { %v1637_v35 = vsel %vm1127_vm10, %v1612_v13, %v4776_v52 }
 0x1bc   : > { %v1103_v31 = vpop.permute.xlu0 %1102  ;;  %2339 = vrot.lane.b32.xlu1 %v4729_v37, %s3682_s12  ;;  %v714_v37 = vld [vmem:[#allocation2 + $0x60] sm:$0xf]  ;;  %v2057_v8 = vsel %vm805_vm9, %v2052_v9, %v4740_v49  ;;  %v2078_v49 = vshll.u32 %v4808_v28, 16  ;;  %v2069_v50 = vsel %vm805_vm9, %v2064_v0, %v4756_v43 }
 0x1bd   : > { %v1154_v59 = vsel %vm1144_vm12, %v1137_v46, %v1103_v31 }
 0x1be   : > { %2467 = vrot.lane.b32.xlu0 %v2417_v47, %s3684_s6  ;;  %3200 = vmatprep.mubr.msk.bf16.mxu0 %vm1169_vm13, %v1154_v59  ;;  %v1432_v21 = vpop.permute.xlu1 %1431  ;;  %v4834_v63 = vrot.slane %v2078_v49, 1 }
 0x1bf   : > { %v1616_v61 = vsel %vm1110_vm11, %v4467_v39, %v1432_v21 }
 0x1c0   : > { %v4789_v4 = vpop.permute.xlu0 %972  ;;  %2471 = vrot.lane.b32.xlu1 %v2427_v40, %s3684_s6  ;;  %v2436_v21 = vsel %vm805_vm9, %v2435_v20, %v4834_v63  ;;  %v5365_v20 = vld [vmem:[#allocation19_spill] sm:$0xff] }
 0x1c1   : > { %v1640_v6 = vsel %vm1127_vm10, %v1616_v61, %v4789_v4 }
 0x1c2   : > { %1910 = vrot.lane.b32.xlu0 %v4439_v18, %s3683_s29  ;;  %v1105_v11 = vpop.permute.xlu1 %1104  ;;  %v4803_v18 = vcombine.low %v714_v37, %v715_v51  ;;  %v2092_v37 = vrot.slane %v2090_v60, 1 }
 0x1c3   : > { %v1156_v14 = vsel %vm1144_vm12, %v1139_v23, %v1105_v11 }
 0x1c4   : > { %v1430_v36 = vpop.permute.xlu0 %1429  ;;  %1912 = vrot.lane.b32.xlu1 %v4457_v55, %s3683_s29  ;;  %3201 = vmatmul.mubr.msk.bf16.gmra.mrb[8].mxu0 %vm1169_vm13, %v1156_v14  ;;  %v3115_v55 = vcombine.low %v733_v25, %v717_v38  ;;  %v2073_v15 = vshll.u32 %v4803_v18, 16 }
 0x1c5   : > { %v1614_v32 = vsel %vm1110_vm11, %v4388_v19, %v1430_v36  ;;  %v5361_v19 = vshrl.u32 %v5360_v16, 16  ;;  %v5362_v36 = vld [vmem:[#allocation28_spill] sm:$0xff] }
 0x1c6   : > { %2321 = vrot.lane.b32.xlu0 %v4471_v5, %s3683_s29  ;;  %v1580_v27 = vpop.permute.xlu1 %1579  ;;  %v2442_v33 = vshll.u32 %v3115_v55, 16  ;;  %v2440_v47 = vshrl.u32 %v3115_v55, 16  ;;  %v5363_v25 = vshrl.u32 %v5362_v36, 16  ;;  %v2075_v0 = vrot.slane %v2073_v15, 1 }
 0x1c7   : > { %v1668_v5 = vsel %vm1144_vm12, %v1637_v35, %v1580_v27  ;;  %v2437_v35 = vshrl.u32 %v4808_v28, 16 }
 0x1c8   : > { %v1434_v34 = vpop.permute.xlu0 %1433  ;;  %1970 = vrot.lane.b32.xlu1 %v4803_v18, %s3682_s12  ;;  %v1737_v53 = vshll.u32 %v1668_v5, 16  ;;  %v2444_v29 = vrot.slane %v2442_v33, 1  ;;  %v1735_v43 = vshrl.u32 %v1668_v5, 16 }
 0x1c9   : > { %v1618_v40 = vsel %vm1110_vm11, %v4408_v10, %v1434_v34  ;;  %v2085_v34 = vshll.u32 %v4819_v62, 16 }
 0x1ca   : > { %2102 = vrot.lane.b32.xlu0 %v2057_v8, %s3684_s6  ;;  %v1448_v30 = vpop.permute.xlu1 %1447  ;;  %v1739_v46 = vrot.slane %v1737_v53, 1  ;;  %v2445_v45 = vor.u32 %v2444_v29, %v2440_v47 }
 0x1cc   : > { %v1584_v12 = vpop.permute.xlu0 %1583  ;;  %2325 = vrot.lane.b32.xlu1 %v4483_v26, %s3683_s29  ;;  %v1639_v26 = vsel %vm1127_vm10, %v1614_v32, %v1448_v30  ;;  %v1740_v3 = vor.u32 %v1739_v46, %v1735_v43  ;;  %v2446_v7 = vsel %vm805_vm9, %v2445_v45, %v2092_v37  ;;  %v3481_v43 = vld [vmem:[#allocation2 + $0x14] ss:$0 sps:$4 sm:$0x11]  }
 0x1cd   : > { %v1672_v54 = vsel %vm1144_vm12, %v1640_v6, %v1584_v12  ;;  %v5364_v12 = vld [vmem:[#allocation29_spill] sm:$0xff] }
 0x1ce   : > { %1972 = vrot.lane.b32.xlu0 %v4819_v62, %s3682_s12  ;;  %v1747_v48 = vshll.u32 %v1672_v54, 16  ;;  %v1450_v42 = vpop.permute.xlu1 %1449  ;;  %v1745_v10 = vshrl.u32 %v1672_v54, 16 }
 0x1cf   : > { %v1642_v1 = vsel %vm1127_vm10, %v1618_v40, %v1450_v42 }
 0x1d0   : > { %v1582_v31 = vpop.permute.xlu0 %1581  ;;  %2104 = vrot.lane.b32.xlu1 %v2069_v50, %s3684_s6  ;;  %v1749_v22 = vrot.slane %v1747_v48, 1 }
 0x1d1   : > { %v1670_v59 = vsel %vm1144_vm12, %v1639_v26, %v1582_v31 }
 0x1d2   : > { %v1741_v56 = vshll.u32 %v1670_v59, 16  ;;  %2323 = vrot.lane.b32.xlu0 %v5361_v19, %s3683_s29  ;;  %v1586_v51 = vpop.permute.xlu1 %1585  ;;  %v1750_v24 = vor.u32 %v1749_v22, %v1745_v10 }
 0x1d3   : > { %v1674_v23 = vsel %vm1144_vm12, %v1642_v1, %v1586_v51 }
 0x1d4   : > { %v1743_v11 = vrot.slane %v1741_v56, 1  ;;  %v915_v9 = vpop.permute.xlu0 %914  ;;  %v1751_v14 = vshll.u32 %v1674_v23, 16  ;;  %2473 = vrot.lane.b32.xlu1 %v2436_v21, %s3684_s6 }
 0x1d5   : > { %v1124_v27 = vsel %vm1110_vm11, %v4461_v57, %v915_v9  ;;  %v2071_v57 = vshrl.u32 %v4803_v18, 16  ;;  %v2087_v18 = vrot.slane %v2085_v34, 1 }
 0x1d6   : > { %2327 = vrot.lane.b32.xlu0 %v5363_v25, %s3683_s29  ;;  %v1744_v13 = vsel %vm805_vm9, %v1740_v3, %v1743_v11  ;;  %v1753_v38 = vrot.slane %v1751_v14, 1  ;;  %v917_v44 = vpop.permute.xlu1 %916  ;;  %v1141_v5 = vsel %vm1127_vm10, %v1124_v27, %v4776_v52  ;;  %v2083_v52 = vshrl.u32 %v4819_v62, 16 }
 0x1d7   : > { %3222 = vmatprep.mubr.msk.bf16.mxu1 %vm1169_vm13, %v1744_v13  ;;  %v1126_v41 = vsel %vm1110_vm11, %v4467_v39, %v917_v44  ;;  %v2076_v33 = vor.u32 %v2075_v0, %v2071_v57 }
 0x1d8   : > { %v2298_v8 = vpop.permute.xlu0 %2297  ;;  %2341 = vrot.lane.b32.xlu1 %v4808_v28, %s3682_s12  ;;  %v1754_v55 = vsel %vm805_vm9, %v1750_v24, %v1753_v38  ;;  %v2447_v28 = vshrl.u32 %v4823_v17, 16  ;;  %v1143_v6 = vsel %vm1127_vm10, %v1126_v41, %v4789_v4 }
 0x1d9   : > { %3223 = vmatmul.mubr.msk.bf16.gmra.mrb[12].mxu1 %vm1169_vm13, %v1754_v55  ;;  %v2081_v62 = vsel %vm805_vm9, %v2076_v33, %v4834_v63  ;;  %v2482_v60 = vsel %vm1110_vm11, %v5365_v20, %v2298_v8  ;;  %v5366_v63 = vld [vmem:[#allocation20_spill] sm:$0xff] }
 0x1da   : > { %2477 = vrot.lane.b32.xlu0 %v2446_v7, %s3684_s6  ;;  %v1107_v61 = vpop.permute.xlu1 %1106 }
 0x1db   : > { %v1158_v49 = vsel %vm1144_vm12, %v1141_v5, %v1107_v61 }
 0x1dc   : > { %v4872_v2 = vpop.permute.xlu0 %1958  ;;  %2343 = vrot.lane.b32.xlu1 %v4823_v17, %s3682_s12  ;;  %3204 = vmatprep.mubr.msk.bf16.mxu0 %vm1169_vm13, %v1158_v49  ;;  %v2088_v17 = vor.u32 %v2087_v18, %v2083_v52 }
 0x1dd   : > { %v2513_v48 = vsel %vm1127_vm10, %v2482_v60, %v4872_v2 }
 0x1de   : > { %2475 = vrot.lane.b32.xlu0 %v2437_v35, %s3684_s6  ;;  %v2302_v30 = vpop.permute.xlu1 %2301  ;;  %v2093_v4 = vsel %vm805_vm9, %v2088_v17, %v2092_v37  ;;  %v3482_v37 = vld [vmem:[#allocation2 + $0x20] ss:$0 sps:$4 sm:$0x11]  }
 0x1df   : > { %v2486_v29 = vsel %vm1110_vm11, %v5366_v63, %v2302_v30  ;;  %v5367_v30 = vld [vmem:[#allocation21_spill] sm:$0xff] }
 0x1e0   : > { %v1109_v53 = vpop.permute.xlu0 %1108  ;;  %2479 = vrot.lane.b32.xlu1 %v2447_v28, %s3684_s6 }
 0x1e1   : > { %v1160_v39 = vsel %vm1144_vm12, %v1143_v6, %v1109_v53 }
 0x1e2   : > { %1914 = vrot.lane.b32.xlu0 %v5364_v12, %s3683_s29  ;;  %3205 = vmatmul.mubr.msk.bf16.gmra.mrb[12].mxu0 %vm1169_vm13, %v1160_v39  ;;  %v1961_v54 = vpop.permute.xlu1 %1960  ;;  %v5368_v39 = vld [vmem:[#allocation22_spill] sm:$0xff] }
 0x1e3   : > { %v2516_v26 = vsel %vm1127_vm10, %v2486_v29, %v1961_v54 }
 0x1e4   : > { %v2300_v50 = vpop.permute.xlu0 %2299  ;;  %1916 = vrot.lane.b32.xlu1 %v4538_v58, %s3683_s29 }
 0x1e5   : > { %v2484_v40 = vsel %vm1110_vm11, %v3481_v43, %v2300_v50 }
 0x1e6   : > { %2106 = vrot.lane.b32.xlu0 %v2081_v62, %s3684_s6  ;;  %v2450_v32 = vpop.permute.xlu1 %2449 }
 0x1e7   : > { %v2538_v47 = vsel %vm1144_vm12, %v2513_v48, %v2450_v32 }
 0x1e8   : > { %v2304_v42 = vpop.permute.xlu0 %2303  ;;  %2108 = vrot.lane.b32.xlu1 %v2093_v4, %s3684_s6  ;;  %v2571_v58 = vshll.u32 %v2538_v47, 16  ;;  %v2569_v51 = vshrl.u32 %v2538_v47, 16  ;;  %v3483_v4 = vld [vmem:[#allocation2 + $0x2c] ss:$0 sps:$4 sm:$0x11]  }
 0x1e9   : > { %v2488_v45 = vsel %vm1110_vm11, %v3482_v37, %v2304_v42 }
 0x1ea   : > { %v2330_v46 = vpop.permute.xlu1 %2329  ;;  %v2573_v19 = vrot.slane %v2571_v58, 1  ;;  %v3484_v58 = vld [vmem:[#allocation2 + $0x38] ss:$0 sps:$4 sm:$0x11]  }
 0x1eb   : > { %v2515_v21 = vsel %vm1127_vm10, %v2484_v40, %v2330_v46 }
 0x1ec   : > { %v2454_v31 = vpop.permute.xlu0 %2453  ;;  %v2574_v10 = vor.u32 %v2573_v19, %v2569_v51 }
 0x1ed   : > { %v2542_v59 = vsel %vm1144_vm12, %v2516_v26, %v2454_v31 }
 0x1ee   : > { %v2581_v56 = vshll.u32 %v2542_v59, 16  ;;  %v2332_v16 = vpop.permute.xlu1 %2331  ;;  %v2579_v13 = vshrl.u32 %v2542_v59, 16 }
 0x1ef   : > { %v2518_v23 = vsel %vm1127_vm10, %v2488_v45, %v2332_v16 }
 0x1f0   : > { %v2452_v22 = vpop.permute.xlu0 %2451  ;;  %v2583_v11 = vrot.slane %v2581_v56, 1 }
 0x1f1   : > { %v2540_v1 = vsel %vm1144_vm12, %v2515_v21, %v2452_v22 }
 0x1f2   : > { %v2575_v3 = vshll.u32 %v2540_v1, 16  ;;  %v2456_v9 = vpop.permute.xlu1 %2455  ;;  %v2584_v44 = vor.u32 %v2583_v11, %v2579_v13 }
 0x1f3   : > { %v2544_v36 = vsel %vm1144_vm12, %v2518_v23, %v2456_v9 }
 0x1f4   : > { %v2577_v14 = vrot.slane %v2575_v3, 1  ;;  %v1903_v25 = vpop.permute.xlu0 %1902  ;;  %v2585_v24 = vshll.u32 %v2544_v36, 16 }
 0x1f5   : > { %v2111_v55 = vsel %vm1110_vm11, %v5365_v20, %v1903_v25 }
 0x1f6   : > { %v2578_v38 = vsel %vm805_vm9, %v2574_v10, %v2577_v14  ;;  %v2587_v7 = vrot.slane %v2585_v24, 1  ;;  %v1905_v15 = vpop.permute.xlu1 %1904  ;;  %v2127_v34 = vsel %vm1127_vm10, %v2111_v55, %v4872_v2  ;;  %v5369_v55 = vld [vmem:[#allocation23_spill] sm:$0xff] }
 0x1f7   : > { %3246 = vmatprep.mubr.msk.bf16.mxu1 %vm1169_vm13, %v2578_v38  ;;  %v2113_v0 = vsel %vm1110_vm11, %v5366_v63, %v1905_v15 }
 0x1f8   : > { %v2306_v27 = vpop.permute.xlu0 %2305  ;;  %v2588_v8 = vsel %vm805_vm9, %v2584_v44, %v2587_v7  ;;  %v2129_v41 = vsel %vm1127_vm10, %v2113_v0, %v1961_v54 }
 0x1f9   : > { %3247 = vmatmul.mubr.msk.bf16.vlgmr.msra.gmra.mrb[16].mxu1 %vm1169_vm13, %v2588_v8  ;;  %v2490_v33 = vsel %vm1110_vm11, %v5367_v30, %v2306_v27 }
 0x1fa   : > { %v1963_v35 = vpop.permute.xlu1 %1962 }
 0x1fb   : > { %v2519_v6 = vsel %vm1127_vm10, %v2490_v33, %v1963_v35  ;;  %v3485_v33 = vld [vmem:[#allocation2 + $0x44] ss:$0 sps:$4 sm:$0x11]  }
 0x1fc   : > { %v2095_v61 = vpop.permute.xlu0 %2094 }
 0x1fd   : > { %v2143_v5 = vsel %vm1144_vm12, %v2127_v34, %v2095_v61 }
 0x1fe   : > { %3228 = vmatprep.mubr.msk.bf16.mxu0 %vm1169_vm13, %v2143_v5  ;;  %v2310_v57 = vpop.permute.xlu1 %2309 }
 0x1ff   : > { %v2494_v12 = vsel %vm1110_vm11, %v5368_v39, %v2310_v57  ;;  %v5370_v57 = vld [vmem:[#allocation24_spill] sm:$0xff] }
 0x200   : > { %v1965_v49 = vpop.permute.xlu0 %1964 }
 0x201   : > { %v2522_v54 = vsel %vm1127_vm10, %v2494_v12, %v1965_v49 }
 0x202   : > { %v2097_v28 = vpop.permute.xlu1 %2096 }
 0x203   : > { %v2145_v52 = vsel %vm1144_vm12, %v2129_v41, %v2097_v28 }
 0x204   : > { %v2308_v18 = vpop.permute.xlu0 %2307  ;;  %3229 = vmatmul.mubr.msk.bf16.vlgmr.msra.gmra.mrb[16].mxu0 %vm1169_vm13, %v2145_v52 }
 0x205   : > { %v2492_v32 = vsel %vm1110_vm11, %v3483_v4, %v2308_v18 }
 0x206   : > { %v2458_v2 = vpop.permute.xlu1 %2457 }
 0x207   : > { %v2546_v17 = vsel %vm1144_vm12, %v2519_v6, %v2458_v2 }
 0x208   : > { %v2312_v53 = vpop.permute.xlu0 %2311  ;;  %v2591_v50 = vshll.u32 %v2546_v17, 16  ;;  %v2589_v26 = vshrl.u32 %v2546_v17, 16 }
 0x209   : > { %v2496_v31 = vsel %vm1110_vm11, %v3484_v58, %v2312_v53 }
 0x20a   : > { %v2334_v62 = vpop.permute.xlu1 %2333  ;;  %v2593_v47 = vrot.slane %v2591_v50, 1  ;;  %v3486_v50 = vld [vmem:[#allocation2 + $0x50] ss:$0 sps:$4 sm:$0x11]  }
 0x20b   : > { %v2521_v63 = vsel %vm1127_vm10, %v2492_v32, %v2334_v62 }
 0x20c   : > { %v2462_v20 = vpop.permute.xlu0 %2461  ;;  %v2594_v16 = vor.u32 %v2593_v47, %v2589_v26 }
 0x20d   : > { %v2550_v60 = vsel %vm1144_vm12, %v2522_v54, %v2462_v20 }
 0x20e   : > { %v2601_v48 = vshll.u32 %v2550_v60, 16  ;;  %v2336_v42 = vpop.permute.xlu1 %2335  ;;  %v2599_v1 = vshrl.u32 %v2550_v60, 16 }
 0x20f   : > { %v2524_v40 = vsel %vm1127_vm10, %v2496_v31, %v2336_v42 }
 0x210   : > { %v2460_v29 = vpop.permute.xlu0 %2459  ;;  %v2603_v43 = vrot.slane %v2601_v48, 1 }
 0x211   : > { %v2548_v46 = vsel %vm1144_vm12, %v2521_v63, %v2460_v29 }
 0x212   : > { %v2595_v59 = vshll.u32 %v2548_v46, 16  ;;  %v2464_v56 = vpop.permute.xlu1 %2463  ;;  %v2604_v45 = vor.u32 %v2603_v43, %v2599_v1 }
 0x213   : > { %v2552_v21 = vsel %vm1144_vm12, %v2524_v40, %v2464_v56 }
 0x214   : > { %v2597_v19 = vrot.slane %v2595_v59, 1  ;;  %v1907_v22 = vpop.permute.xlu0 %1906  ;;  %v2605_v51 = vshll.u32 %v2552_v21, 16 }
 0x215   : > { %v2115_v9 = vsel %vm1110_vm11, %v5367_v30, %v1907_v22 }
 0x216   : > { %v2598_v37 = vsel %vm805_vm9, %v2594_v16, %v2597_v19  ;;  %v2607_v3 = vrot.slane %v2605_v51, 1  ;;  %v1909_v11 = vpop.permute.xlu1 %1908  ;;  %v2131_v36 = vsel %vm1127_vm10, %v2115_v9, %v1963_v35 }
 0x217   : > { %3250 = vmatprep.mubr.msk.bf16.mxu1 %vm1169_vm13, %v2598_v37  ;;  %v2117_v38 = vsel %vm1110_vm11, %v5368_v39, %v1909_v11 }
 0x218   : > { %v2314_v23 = vpop.permute.xlu0 %2313  ;;  %v2608_v10 = vsel %vm805_vm9, %v2604_v45, %v2607_v3  ;;  %v2133_v15 = vsel %vm1127_vm10, %v2117_v38, %v1965_v49 }
 0x219   : > { %3251 = vmatmul.mubr.msk.bf16.gmra.mrb[20].mxu1 %vm1169_vm13, %v2608_v10  ;;  %v2498_v34 = vsel %vm1110_vm11, %v5369_v55, %v2314_v23  ;;  %v5371_v10 = vld [vmem:[#allocation25_spill] sm:$0xff] }
 0x21a   : > { %v1967_v14 = vpop.permute.xlu1 %1966 }
 0x21b   : > { %v2525_v61 = vsel %vm1127_vm10, %v2498_v34, %v1967_v14 }
 0x21c   : > { %v2099_v25 = vpop.permute.xlu0 %2098 }
 0x21d   : > { %v2147_v13 = vsel %vm1144_vm12, %v2131_v36, %v2099_v25 }
 0x21e   : > { %3232 = vmatprep.mubr.msk.bf16.mxu0 %vm1169_vm13, %v2147_v13  ;;  %v2318_v24 = vpop.permute.xlu1 %2317 }
 0x21f   : > { %v2502_v0 = vsel %vm1110_vm11, %v5370_v57, %v2318_v24  ;;  %v5372_v24 = vld [vmem:[#allocation27_spill] sm:$0xff] }
 0x220   : > { %v1969_v44 = vpop.permute.xlu0 %1968 }
 0x221   : > { %v2528_v49 = vsel %vm1127_vm10, %v2502_v0, %v1969_v44 }
 0x222   : > { %v2101_v7 = vpop.permute.xlu1 %2100 }
 0x223   : > { %v2149_v27 = vsel %vm1144_vm12, %v2133_v15, %v2101_v7 }
 0x224   : > { %v2316_v8 = vpop.permute.xlu0 %2315  ;;  %3233 = vmatmul.mubr.msk.bf16.gmra.mrb[20].mxu0 %vm1169_vm13, %v2149_v27 }
 0x225   : > { %v2500_v2 = vsel %vm1110_vm11, %v3485_v33, %v2316_v8 }
 0x226   : > { %v2466_v35 = vpop.permute.xlu1 %2465 }
 0x227   : > { %v2554_v41 = vsel %vm1144_vm12, %v2525_v61, %v2466_v35 }
 0x228   : > { %v2320_v5 = vpop.permute.xlu0 %2319  ;;  %v2611_v52 = vshll.u32 %v2554_v41, 16  ;;  %v2609_v54 = vshrl.u32 %v2554_v41, 16 }
 0x229   : > { %v2504_v20 = vsel %vm1110_vm11, %v3486_v50, %v2320_v5 }
 0x22a   : > { %v2338_v28 = vpop.permute.xlu1 %2337  ;;  %v2613_v39 = vrot.slane %v2611_v52, 1 }
 0x22b   : > { %v2527_v12 = vsel %vm1127_vm10, %v2500_v2, %v2338_v28 }
 0x22c   : > { %v2470_v18 = vpop.permute.xlu0 %2469  ;;  %v2614_v42 = vor.u32 %v2613_v39, %v2609_v54 }
 0x22d   : > { %v2558_v30 = vsel %vm1144_vm12, %v2528_v49, %v2470_v18 }
 0x22e   : > { %v2621_v6 = vshll.u32 %v2558_v30, 16  ;;  %v2340_v53 = vpop.permute.xlu1 %2339  ;;  %v2619_v46 = vshrl.u32 %v2558_v30, 16 }
 0x22f   : > { %v2530_v32 = vsel %vm1127_vm10, %v2504_v20, %v2340_v53 }
 0x230   : > { %v2468_v17 = vpop.permute.xlu0 %2467  ;;  %v2623_v4 = vrot.slane %v2621_v6, 1 }
 0x231   : > { %v2556_v62 = vsel %vm1144_vm12, %v2527_v12, %v2468_v17  ;;  %v3488_v17 = vld [vmem:[#allocation2 + $0x68] ss:$0 sps:$4 sm:$0x11]  }
 0x232   : > { %v2615_v60 = vshll.u32 %v2556_v62, 16  ;;  %v2472_v48 = vpop.permute.xlu1 %2471  ;;  %v2624_v31 = vor.u32 %v2623_v4, %v2619_v46 }
 0x233   : > { %v2560_v63 = vsel %vm1144_vm12, %v2530_v32, %v2472_v48 }
 0x234   : > { %v2617_v47 = vrot.slane %v2615_v60, 1  ;;  %v1911_v29 = vpop.permute.xlu0 %1910  ;;  %v2625_v26 = vshll.u32 %v2560_v63, 16 }
 0x235   : > { %v2119_v56 = vsel %vm1110_vm11, %v5369_v55, %v1911_v29 }
 0x236   : > { %v2618_v58 = vsel %vm805_vm9, %v2614_v42, %v2617_v47  ;;  %v2627_v59 = vrot.slane %v2625_v26, 1  ;;  %v1913_v43 = vpop.permute.xlu1 %1912  ;;  %v2135_v21 = vsel %vm1127_vm10, %v2119_v56, %v1967_v14 }
 0x237   : > { %3254 = vmatprep.mubr.msk.bf16.mxu1 %vm1169_vm13, %v2618_v58  ;;  %v2121_v37 = vsel %vm1110_vm11, %v5370_v57, %v1913_v43  ;;  %v3487_v57 = vld [vmem:[#allocation2 + $0x5c] ss:$0 sps:$4 sm:$0x11]  }
 0x238   : > { %v2322_v40 = vpop.permute.xlu0 %2321  ;;  %v2628_v16 = vsel %vm805_vm9, %v2624_v31, %v2627_v59  ;;  %v2137_v11 = vsel %vm1127_vm10, %v2121_v37, %v1969_v44  ;;  %v4993_v44 = vld [vmem:[#allocation8] ss:$0 sm:$0xff] }
 0x239   : > { %3255 = vmatmul.mubr.msk.bf16.gmra.mrb[24].mxu1 %vm1169_vm13, %v2628_v16  ;;  %v2506_v14 = vsel %vm1110_vm11, %v5371_v10, %v2322_v40 }
 0x23a   : > { %v4974_v19 = vpop.permute.xlu1 %1970 }
 0x23b   : > { %v2531_v25 = vsel %vm1127_vm10, %v2506_v14, %v4974_v19 }
 0x23c   : > { %v2103_v22 = vpop.permute.xlu0 %2102 }
 0x23d   : > { %v2151_v1 = vsel %vm1144_vm12, %v2135_v21, %v2103_v22 }
 0x23e   : > { %3236 = vmatprep.mubr.msk.bf16.mxu0 %vm1169_vm13, %v2151_v1  ;;  %v2326_v51 = vpop.permute.xlu1 %2325 }
 0x23f   : > { %v2510_v38 = vsel %vm1110_vm11, %v5372_v24, %v2326_v51 }
 0x240   : > { %v4981_v45 = vpop.permute.xlu0 %1972 }
 0x241   : > { %v2534_v27 = vsel %vm1127_vm10, %v2510_v38, %v4981_v45 }
 0x242   : > { %v2105_v3 = vpop.permute.xlu1 %2104 }
 0x243   : > { %v2153_v23 = vsel %vm1144_vm12, %v2137_v11, %v2105_v3 }
 0x244   : > { %v2324_v9 = vpop.permute.xlu0 %2323  ;;  %3237 = vmatmul.mubr.msk.bf16.gmra.mrb[24].mxu0 %vm1169_vm13, %v2153_v23 }
 0x245   : > { %v2508_v0 = vsel %vm1110_vm11, %v3487_v57, %v2324_v9 }
 0x246   : > { %v2474_v36 = vpop.permute.xlu1 %2473 }
 0x247   : > { %v2562_v7 = vsel %vm1144_vm12, %v2531_v25, %v2474_v36 }
 0x248   : > { %v2328_v13 = vpop.permute.xlu0 %2327  ;;  %v2631_v8 = vshll.u32 %v2562_v7, 16  ;;  %v2629_v12 = vshrl.u32 %v2562_v7, 16 }
 0x249   : > { %v2512_v62 = vsel %vm1110_vm11, %v3488_v17, %v2328_v13 }
 0x24a   : > { %v2342_v15 = vpop.permute.xlu1 %2341  ;;  %v2633_v18 = vrot.slane %v2631_v8, 1 }
 0x24b   : > { %v2533_v30 = vsel %vm1127_vm10, %v2508_v0, %v2342_v15 }
 0x24c   : > { %v2478_v55 = vpop.permute.xlu0 %2477  ;;  %v3212_v35 = vpop.f32.mrb[0].mxu1  ;;  %v2634_v4 = vor.u32 %v2633_v18, %v2629_v12 }
 0x24d   : > { %v2566_v34 = vsel %vm1144_vm12, %v2534_v27, %v2478_v55  ;;  %v1831_v61 = vadd.f32 %v3212_v35, %v4993_v44  ;;  %v1822_v5 = vpop.f32.mrb[1].mxu1 }
 0x24e   : > { %v2641_v41 = vshll.u32 %v2566_v34, 16  ;;  %v1823_v28 = vadd.f32 %v4993_v44, %v1822_v5  ;;  %v2344_v49 = vpop.permute.xlu1 %2343  ;;  %v3213_v52 = vpop.f32.mrb[2].mxu1  ;;  %v2639_v47 = vshrl.u32 %v2566_v34, 16 }
 0x24f   : > { %3053 = vst.msk [vmem:[%s4098_s24 + $0x90] sm:$0xff] %vm1110_vm11, %v1831_v61  ;;  %v1834_v33 = vadd.f32 %v3213_v52, %v4993_v44  ;;  %v1825_v2 = vpop.f32.mrb[3].mxu1  ;;  %v2536_v20 = vsel %vm1127_vm10, %v2512_v62, %v2344_v49 }
 0x250   : > { %v2476_v6 = vpop.permute.xlu0 %2475  ;;  %3051 = vst.msk [vmem:[%s4098_s24 + $0x80] sm:$0xff] %vm1110_vm11, %v1823_v28  ;;  %v1826_v53 = vadd.f32 %v4993_v44, %v1825_v2  ;;  %v2643_v50 = vrot.slane %v2641_v41, 1 }
 0x251   : > { %v2564_v39 = vsel %vm1144_vm12, %v2533_v30, %v2476_v6  ;;  %3054 = vst.msk [vmem:[%s4098_s24 + $0x98] sm:$0xff] %vm1110_vm11, %v1834_v33 }
 0x252   : > { %v2635_v54 = vshll.u32 %v2564_v39, 16  ;;  %3052 = vst.msk [vmem:[%s4098_s24 + $0x88] sm:$0xff] %vm1110_vm11, %v1826_v53  ;;  %v2480_v60 = vpop.permute.xlu1 %2479  ;;  %v2644_v26 = vor.u32 %v2643_v50, %v2639_v47 }
 0x253   : > { %v2568_v48 = vsel %vm1144_vm12, %v2536_v20, %v2480_v60 }
 0x254   : > { %v2637_v32 = vrot.slane %v2635_v54, 1  ;;  %v1915_v42 = vpop.permute.xlu0 %1914  ;;  %v2645_v63 = vshll.u32 %v2568_v48, 16 }
 0x255   : > { %v2123_v29 = vsel %vm1110_vm11, %v5371_v10, %v1915_v42 }
 0x256   : > { %v2638_v46 = vsel %vm805_vm9, %v2634_v4, %v2637_v32  ;;  %v2647_v58 = vrot.slane %v2645_v63, 1  ;;  %v1917_v31 = vpop.permute.xlu1 %1916  ;;  %v2139_v40 = vsel %vm1127_vm10, %v2123_v29, %v4974_v19 }
 0x257   : > { %3258 = vmatprep.mubr.msk.bf16.mxu1 %vm1169_vm13, %v2638_v46  ;;  %v2125_v59 = vsel %vm1110_vm11, %v5372_v24, %v1917_v31  ;;  %v3194_v43 = vpop.f32.mrb[0].mxu0 }
 0x258   : > { %v2107_v56 = vpop.permute.xlu0 %2106  ;;  %v1229_v16 = vadd.f32 %v3194_v43, %v4993_v44  ;;  %v1220_v22 = vpop.f32.mrb[1].mxu0  ;;  %v2648_v1 = vsel %vm805_vm9, %v2644_v26, %v2647_v58  ;;  %v2141_v11 = vsel %vm1127_vm10, %v2125_v59, %v4981_v45 }
 0x259   : > { %v2155_v21 = vsel %vm1144_vm12, %v2139_v40, %v2107_v56  ;;  %v1221_v51 = vadd.f32 %v4993_v44, %v1220_v22  ;;  %v3195_v37 = vpop.f32.mrb[2].mxu0  ;;  %3259 = vmatmul.mubr.msk.bf16.gmra.mrb[28].mxu1 %vm1169_vm13, %v2648_v1 }
 0x25a   : > { %3240 = vmatprep.mubr.msk.bf16.mxu0 %vm1169_vm13, %v2155_v21  ;;  %1285 = vst.msk [vmem:[%s4098_s24 + $0x10] sm:$0xff] %vm1110_vm11, %v1229_v16  ;;  %v1232_v19 = vadd.f32 %v3195_v37, %v4993_v44  ;;  %v2109_v3 = vpop.permute.xlu1 %2108  ;;  %v1223_v23 = vpop.f32.mrb[3].mxu0 }
 0x25b   : > { %1283 = vst.msk [vmem:[%s4098_s24] sm:$0xff] %vm1110_vm11, %v1221_v51  ;;  %v2157_v9 = vsel %vm1144_vm12, %v2141_v11, %v2109_v3  ;;  %v1224_v10 = vadd.f32 %v4993_v44, %v1223_v23 }
 0x25c   : > { %1286 = vst.msk [vmem:[%s4098_s24 + $0x18] sm:$0xff] %vm1110_vm11, %v1232_v19  ;;  %3241 = vmatmul.mubr.msk.bf16.gmra.mrb[28].mxu0 %vm1169_vm13, %v2157_v9 }
 0x25d   : > { %1284 = vst.msk [vmem:[%s4098_s24 + $0x8] sm:$0xff] %vm1110_vm11, %v1224_v10 }
 0x26c   : > { %v3216_v14 = vpop.f32.mrb[4].mxu1 }
 0x26d   : > { %v1847_v36 = vadd.f32 %v3216_v14, %v4993_v44  ;;  %v1838_v45 = vpop.f32.mrb[5].mxu1 }
 0x26e   : > { %v1839_v25 = vadd.f32 %v4993_v44, %v1838_v45  ;;  %v3217_v13 = vpop.f32.mrb[6].mxu1 }
 0x26f   : > { %3057 = vst.msk [vmem:[%s4098_s24 + $0xb0] sm:$0xff] %vm1110_vm11, %v1847_v36  ;;  %v1850_v24 = vadd.f32 %v3217_v13, %v4993_v44  ;;  %v1841_v38 = vpop.f32.mrb[7].mxu1 }
 0x270   : > { %3055 = vst.msk [vmem:[%s4098_s24 + $0xa0] sm:$0xff] %vm1110_vm11, %v1839_v25  ;;  %v1842_v7 = vadd.f32 %v4993_v44, %v1841_v38 }
 0x271   : > { %3058 = vst.msk [vmem:[%s4098_s24 + $0xb8] sm:$0xff] %vm1110_vm11, %v1850_v24 }
 0x272   : > { %3056 = vst.msk [vmem:[%s4098_s24 + $0xa8] sm:$0xff] %vm1110_vm11, %v1842_v7 }
 0x277   : > { %v3198_v15 = vpop.f32.mrb[4].mxu0 }
 0x278   : > { %v1245_v27 = vadd.f32 %v3198_v15, %v4993_v44  ;;  %v1236_v8 = vpop.f32.mrb[5].mxu0 }
 0x279   : > { %v1237_v55 = vadd.f32 %v4993_v44, %v1236_v8  ;;  %v3199_v34 = vpop.f32.mrb[6].mxu0 }
 0x27a   : > { %1289 = vst.msk [vmem:[%s4098_s24 + $0x30] sm:$0xff] %vm1110_vm11, %v1245_v27  ;;  %v1248_v35 = vadd.f32 %v3199_v34, %v4993_v44  ;;  %v1239_v61 = vpop.f32.mrb[7].mxu0 }
 0x27b   : > { %1287 = vst.msk [vmem:[%s4098_s24 + $0x20] sm:$0xff] %vm1110_vm11, %v1237_v55  ;;  %v1240_v5 = vadd.f32 %v4993_v44, %v1239_v61 }
 0x27c   : > { %1290 = vst.msk [vmem:[%s4098_s24 + $0x38] sm:$0xff] %vm1110_vm11, %v1248_v35 }
 0x27d   : > { %1288 = vst.msk [vmem:[%s4098_s24 + $0x28] sm:$0xff] %vm1110_vm11, %v1240_v5 }
 0x28c   : > { %v3220_v57 = vpop.f32.mrb[8].mxu1 }
 0x28d   : > { %v1863_v0 = vadd.f32 %v3220_v57, %v4993_v44  ;;  %v1854_v41 = vpop.f32.mrb[9].mxu1 }
 0x28e   : > { %v1855_v28 = vadd.f32 %v4993_v44, %v1854_v41  ;;  %v3221_v49 = vpop.f32.mrb[10].mxu1 }
 0x28f   : > { %3061 = vst.msk [vmem:[%s4098_s24 + $0xd0] sm:$0xff] %vm1110_vm11, %v1863_v0  ;;  %v1866_v52 = vadd.f32 %v3221_v49, %v4993_v44  ;;  %v1857_v18 = vpop.f32.mrb[11].mxu1 }
 0x290   : > { %3059 = vst.msk [vmem:[%s4098_s24 + $0xc0] sm:$0xff] %vm1110_vm11, %v1855_v28  ;;  %v1858_v30 = vadd.f32 %v4993_v44, %v1857_v18 }
 0x291   : > { %3062 = vst.msk [vmem:[%s4098_s24 + $0xd8] sm:$0xff] %vm1110_vm11, %v1866_v52 }
 0x292   : > { %3060 = vst.msk [vmem:[%s4098_s24 + $0xc8] sm:$0xff] %vm1110_vm11, %v1858_v30 }
 0x297   : > { %v3202_v33 = vpop.f32.mrb[8].mxu0 }
 0x298   : > { %v1261_v2 = vadd.f32 %v3202_v33, %v4993_v44  ;;  %v1252_v6 = vpop.f32.mrb[9].mxu0 }
 0x299   : > { %v1253_v53 = vadd.f32 %v4993_v44, %v1252_v6  ;;  %v3203_v39 = vpop.f32.mrb[10].mxu0 }
 0x29a   : > { %1293 = vst.msk [vmem:[%s4098_s24 + $0x50] sm:$0xff] %vm1110_vm11, %v1261_v2  ;;  %v1264_v12 = vadd.f32 %v3203_v39, %v4993_v44  ;;  %v1255_v17 = vpop.f32.mrb[11].mxu0 }
 0x29b   : > { %1291 = vst.msk [vmem:[%s4098_s24 + $0x40] sm:$0xff] %vm1110_vm11, %v1253_v53  ;;  %v1256_v62 = vadd.f32 %v4993_v44, %v1255_v17 }
 0x29c   : > { %1294 = vst.msk [vmem:[%s4098_s24 + $0x58] sm:$0xff] %vm1110_vm11, %v1264_v12 }
 0x29d   : > { %1292 = vst.msk [vmem:[%s4098_s24 + $0x48] sm:$0xff] %vm1110_vm11, %v1256_v62 }
 0x2ac   : > { %v3224_v54 = vpop.f32.mrb[12].mxu1 }
 0x2ad   : > { %v1879_v50 = vadd.f32 %v3224_v54, %v4993_v44  ;;  %v1870_v20 = vpop.f32.mrb[13].mxu1 }
 0x2ae   : > { %v1871_v60 = vadd.f32 %v4993_v44, %v1870_v20  ;;  %v3225_v4 = vpop.f32.mrb[14].mxu1 }
 0x2af   : > { %3065 = vst.msk [vmem:[%s4098_s24 + $0xf0] sm:$0xff] %vm1110_vm11, %v1879_v50  ;;  %v1882_v32 = vadd.f32 %v3225_v4, %v4993_v44  ;;  %v1873_v48 = vpop.f32.mrb[15].mxu1 }
 0x2b0   : > { %3063 = vst.msk [vmem:[%s4098_s24 + $0xe0] sm:$0xff] %vm1110_vm11, %v1871_v60  ;;  %v1874_v42 = vadd.f32 %v4993_v44, %v1873_v48 }
 0x2b1   : > { %3066 = vst.msk [vmem:[%s4098_s24 + $0xf8] sm:$0xff] %vm1110_vm11, %v1882_v32 }
 0x2b2   : > { %3064 = vst.msk [vmem:[%s4098_s24 + $0xe8] sm:$0xff] %vm1110_vm11, %v1874_v42 }
 0x2b5   : > { %v3206_v47 = vpop.f32.mrb[12].mxu0 }
 0x2b6   : > { %v1277_v63 = vadd.f32 %v3206_v47, %v4993_v44  ;;  %v1268_v29 = vpop.f32.mrb[13].mxu0 }
 0x2b7   : > { %v1269_v46 = vadd.f32 %v4993_v44, %v1268_v29  ;;  %v3207_v26 = vpop.f32.mrb[14].mxu0 }
 0x2b8   : > { %1297 = vst.msk [vmem:[%s4098_s24 + $0x70] sm:$0xff] %vm1110_vm11, %v1277_v63  ;;  %v1280_v58 = vadd.f32 %v3207_v26, %v4993_v44  ;;  %v1271_v31 = vpop.f32.mrb[15].mxu0 }
 0x2b9   : > { %1295 = vst.msk [vmem:[%s4098_s24 + $0x60] sm:$0xff] %vm1110_vm11, %v1269_v46  ;;  %v1272_v59 = vadd.f32 %v4993_v44, %v1271_v31 }
 0x2ba   : > { %1298 = vst.msk [vmem:[%s4098_s24 + $0x78] sm:$0xff] %vm1110_vm11, %v1280_v58 }
 0x2bb   : > { %1296 = vst.msk [vmem:[%s4098_s24 + $0x68] sm:$0xff] %vm1110_vm11, %v1272_v59 }
 0x2cc   : > { %v3248_v43 = vpop.f32.mrb[16].mxu1 }
 0x2cd   : > { %v2725_v40 = vadd.f32 %v3248_v43, %v4993_v44  ;;  %v2716_v56 = vpop.f32.mrb[17].mxu1 }
 0x2ce   : > { %v2717_v16 = vadd.f32 %v4993_v44, %v2716_v56  ;;  %v3249_v21 = vpop.f32.mrb[18].mxu1 }
 0x2cf   : > { %3127 = vst.msk [vmem:[%s4098_s24 + $0x190] sm:$0xff] %vm1110_vm11, %v2725_v40  ;;  %v2728_v22 = vadd.f32 %v3249_v21, %v4993_v44  ;;  %v2719_v1 = vpop.f32.mrb[19].mxu1 }
 0x2d0   : > { %3125 = vst.msk [vmem:[%s4098_s24 + $0x180] sm:$0xff] %vm1110_vm11, %v2717_v16  ;;  %v2720_v51 = vadd.f32 %v4993_v44, %v2719_v1 }
 0x2d1   : > { %3128 = vst.msk [vmem:[%s4098_s24 + $0x198] sm:$0xff] %vm1110_vm11, %v2728_v22 }
 0x2d2   : > { %3126 = vst.msk [vmem:[%s4098_s24 + $0x188] sm:$0xff] %vm1110_vm11, %v2720_v51 }
 0x2d7   : > { %v3230_v37 = vpop.f32.mrb[16].mxu0 }
 0x2d8   : > { %v2226_v19 = vadd.f32 %v3230_v37, %v4993_v44  ;;  %v2217_v3 = vpop.f32.mrb[17].mxu0 }
 0x2d9   : > { %v2218_v11 = vadd.f32 %v4993_v44, %v2217_v3  ;;  %v3231_v23 = vpop.f32.mrb[18].mxu0 }
 0x2da   : > { %3094 = vst.msk [vmem:[%s4098_s24 + $0x110] sm:$0xff] %vm1110_vm11, %v2226_v19  ;;  %v2229_v9 = vadd.f32 %v3231_v23, %v4993_v44  ;;  %v2220_v10 = vpop.f32.mrb[19].mxu0 }
 0x2db   : > { %3092 = vst.msk [vmem:[%s4098_s24 + $0x100] sm:$0xff] %vm1110_vm11, %v2218_v11  ;;  %v2221_v14 = vadd.f32 %v4993_v44, %v2220_v10 }
 0x2dc   : > { %3095 = vst.msk [vmem:[%s4098_s24 + $0x118] sm:$0xff] %vm1110_vm11, %v2229_v9 }
 0x2dd   : > { %3093 = vst.msk [vmem:[%s4098_s24 + $0x108] sm:$0xff] %vm1110_vm11, %v2221_v14 }
 0x2ec   : > { %v3252_v36 = vpop.f32.mrb[20].mxu1 }
 0x2ed   : > { %v2741_v45 = vadd.f32 %v3252_v36, %v4993_v44  ;;  %v2732_v25 = vpop.f32.mrb[21].mxu1 }
 0x2ee   : > { %v2733_v13 = vadd.f32 %v4993_v44, %v2732_v25  ;;  %v3253_v24 = vpop.f32.mrb[22].mxu1 }
 0x2ef   : > { %3131 = vst.msk [vmem:[%s4098_s24 + $0x1b0] sm:$0xff] %vm1110_vm11, %v2741_v45  ;;  %v2744_v38 = vadd.f32 %v3253_v24, %v4993_v44  ;;  %v2735_v7 = vpop.f32.mrb[23].mxu1 }
 0x2f0   : > { %3129 = vst.msk [vmem:[%s4098_s24 + $0x1a0] sm:$0xff] %vm1110_vm11, %v2733_v13  ;;  %v2736_v15 = vadd.f32 %v4993_v44, %v2735_v7 }
 0x2f1   : > { %3132 = vst.msk [vmem:[%s4098_s24 + $0x1b8] sm:$0xff] %vm1110_vm11, %v2744_v38 }
 0x2f2   : > { %3130 = vst.msk [vmem:[%s4098_s24 + $0x1a8] sm:$0xff] %vm1110_vm11, %v2736_v15 }
 0x2f7   : > { %v3234_v27 = vpop.f32.mrb[20].mxu0 }
 0x2f8   : > { %v2242_v8 = vadd.f32 %v3234_v27, %v4993_v44  ;;  %v2233_v55 = vpop.f32.mrb[21].mxu0 }
 0x2f9   : > { %v2234_v34 = vadd.f32 %v4993_v44, %v2233_v55  ;;  %v3235_v35 = vpop.f32.mrb[22].mxu0 }
 0x2fa   : > { %3098 = vst.msk [vmem:[%s4098_s24 + $0x130] sm:$0xff] %vm1110_vm11, %v2242_v8  ;;  %v2245_v61 = vadd.f32 %v3235_v35, %v4993_v44  ;;  %v2236_v5 = vpop.f32.mrb[23].mxu0 }
 0x2fb   : > { %3096 = vst.msk [vmem:[%s4098_s24 + $0x120] sm:$0xff] %vm1110_vm11, %v2234_v34  ;;  %v2237_v57 = vadd.f32 %v4993_v44, %v2236_v5 }
 0x2fc   : > { %3099 = vst.msk [vmem:[%s4098_s24 + $0x138] sm:$0xff] %vm1110_vm11, %v2245_v61 }
 0x2fd   : > { %3097 = vst.msk [vmem:[%s4098_s24 + $0x128] sm:$0xff] %vm1110_vm11, %v2237_v57 }
 0x30c   : > { %v3256_v0 = vpop.f32.mrb[24].mxu1 }
 0x30d   : > { %v2757_v41 = vadd.f32 %v3256_v0, %v4993_v44  ;;  %v2748_v28 = vpop.f32.mrb[25].mxu1 }
 0x30e   : > { %v2749_v49 = vadd.f32 %v4993_v44, %v2748_v28  ;;  %v3257_v52 = vpop.f32.mrb[26].mxu1 }
 0x30f   : > { %3135 = vst.msk [vmem:[%s4098_s24 + $0x1d0] sm:$0xff] %vm1110_vm11, %v2757_v41  ;;  %v2760_v18 = vadd.f32 %v3257_v52, %v4993_v44  ;;  %v2751_v30 = vpop.f32.mrb[27].mxu1 }
 0x310   : > { %3133 = vst.msk [vmem:[%s4098_s24 + $0x1c0] sm:$0xff] %vm1110_vm11, %v2749_v49  ;;  %v2752_v33 = vadd.f32 %v4993_v44, %v2751_v30 }
 0x311   : > { %3136 = vst.msk [vmem:[%s4098_s24 + $0x1d8] sm:$0xff] %vm1110_vm11, %v2760_v18 }
 0x312   : > { %3134 = vst.msk [vmem:[%s4098_s24 + $0x1c8] sm:$0xff] %vm1110_vm11, %v2752_v33 }
 0x317   : > { %v3238_v2 = vpop.f32.mrb[24].mxu0 }
 0x318   : > { %v2258_v6 = vadd.f32 %v3238_v2, %v4993_v44  ;;  %v2249_v53 = vpop.f32.mrb[25].mxu0 }
 0x319   : > { %v2250_v39 = vadd.f32 %v4993_v44, %v2249_v53  ;;  %v3239_v12 = vpop.f32.mrb[26].mxu0 }
 0x31a   : > { %3102 = vst.msk [vmem:[%s4098_s24 + $0x150] sm:$0xff] %vm1110_vm11, %v2258_v6  ;;  %v2261_v17 = vadd.f32 %v3239_v12, %v4993_v44  ;;  %v2252_v62 = vpop.f32.mrb[27].mxu0 }
 0x31b   : > { %3100 = vst.msk [vmem:[%s4098_s24 + $0x140] sm:$0xff] %vm1110_vm11, %v2250_v39  ;;  %v2253_v54 = vadd.f32 %v4993_v44, %v2252_v62 }
 0x31c   : > { %3103 = vst.msk [vmem:[%s4098_s24 + $0x158] sm:$0xff] %vm1110_vm11, %v2261_v17 }
 0x31d   : > { %3101 = vst.msk [vmem:[%s4098_s24 + $0x148] sm:$0xff] %vm1110_vm11, %v2253_v54 }
 0x32c   : > { %v3260_v50 = vpop.f32.mrb[28].mxu1 }
 0x32d   : > { %v2773_v20 = vadd.f32 %v3260_v50, %v4993_v44  ;;  %v2764_v60 = vpop.f32.mrb[29].mxu1 }
 0x32e   : > { %v2765_v4 = vadd.f32 %v4993_v44, %v2764_v60  ;;  %v3261_v32 = vpop.f32.mrb[30].mxu1 }
 0x32f   : > { %3139 = vst.msk [vmem:[%s4098_s24 + $0x1f0] sm:$0xff] %vm1110_vm11, %v2773_v20  ;;  %v2776_v48 = vadd.f32 %v3261_v32, %v4993_v44  ;;  %v3242_v42 = vpop.f32.mrb[28].mxu0  ;;  %v2767_v47 = vpop.f32.mrb[31].mxu1 }
 0x330   : > { %3137 = vst.msk [vmem:[%s4098_s24 + $0x1e0] sm:$0xff] %vm1110_vm11, %v2765_v4  ;;  %v2274_v63 = vadd.f32 %v3242_v42, %v4993_v44  ;;  %v2768_v29 = vadd.f32 %v4993_v44, %v2767_v47  ;;  %v2265_v46 = vpop.f32.mrb[29].mxu0 }
 0x331   : > { %3140 = vst.msk [vmem:[%s4098_s24 + $0x1f8] sm:$0xff] %vm1110_vm11, %v2776_v48  ;;  %v2266_v26 = vadd.f32 %v4993_v44, %v2265_v46  ;;  %v3243_v58 = vpop.f32.mrb[30].mxu0 }
 0x332   : > { %3106 = vst.msk [vmem:[%s4098_s24 + $0x170] sm:$0xff] %vm1110_vm11, %v2274_v63  ;;  %3138 = vst.msk [vmem:[%s4098_s24 + $0x1e8] sm:$0xff] %vm1110_vm11, %v2768_v29  ;;  %v2277_v31 = vadd.f32 %v3243_v58, %v4993_v44  ;;  %v2268_v59 = vpop.f32.mrb[31].mxu0 }
 0x333   : > { %3104 = vst.msk [vmem:[%s4098_s24 + $0x160] sm:$0xff] %vm1110_vm11, %v2266_v26  ;;  %v2269_v43 = vadd.f32 %v4993_v44, %v2268_v59 }
 0x334   : > { %3107 = vst.msk [vmem:[%s4098_s24 + $0x178] sm:$0xff] %vm1110_vm11, %v2277_v31 }
 0x335   : > { %3105 = vst.msk [vmem:[%s4098_s24 + $0x168] sm:$0xff] %vm1110_vm11, %v2269_v43 }
 0x336   : > { %s3153_s11 = sshll.u32 %s3657_s18, 4  ;;  %s3144_s23 = sshll.u32 %s3661_s19, 7 }
 0x337   : > { %s2810_s7 = sadd.s32 %s3153_s11, %s3144_s23  ;;  %s2829_s5 = sshll.u32 %s4098_s24, 4  ;;  %s2830_s5 = int_to_ptr.vmem [resolvable:$true] %s2829_s5 }
 0x338   : > { %s3145_s30 = sshll.u32 %s2810_s7, 7  ;;  %s3685_s27 = smov 2048  }
 0x339   : > { %s2812_s20 = scalar_lea.hbm %s5274_s3, %s3145_s30  ;;  %p5373_p9 = scmp.ne.s32.totalorder %s5319_s28, 0 }
 0x33a   : > { %s3686_s4 = smov 4096   ;;  %s3687_s8 = smov 16  }
 0x33b   : > { %3272 = sst [smem:[#allocation11]] (%p5373_p9), %s3685_s27  ;;  %s3688_s18 = smov 128  }
 0x33c   : > { %3273 = sst [smem:[#allocation11 + $0x1]] (%p5373_p9), %s3686_s4  ;;  %s3689_s19 = smov 8  }
 0x33d   : > { %3274 = sst [smem:[#allocation11 + $0x2]] (%p5373_p9), %s3687_s8  ;;  %s3690_s24 = smov [#allocation10]  }
 0x33e   : > { %3275 = sst [smem:[#allocation11 + $0x3]] (%p5373_p9), %s3688_s18  ;;  %s3691_s26 = smov 0  }
 0x33f   : > { %3276 = sst [smem:[#allocation11 + $0x4]] (%p5373_p9), %s3688_s18 }
 0x340   : > { %3277 = sst [smem:[#allocation11 + $0x5]] (%p5373_p9), %s3689_s19 }
 0x341   : > { %3278 = dma.general (%p5373_p9), %s2830_s5, 8192, %s2812_s20, %s2797_s1, %s3690_s24, [#allocation11], %s3691_s26, 0  }
 0x342 PF: > { %s5374_s12 = sld [smem:[#allocation15_spill]]  ;;  %s5375_s29 = sld [smem:[#allocation17_spill]] }
 0x343   : > { %p3300_p11 = scmp.ge.s32.totalorder %s3673_s22, 2 }
 0x348   : > { %s2857_s6 = sand.u32 1, %s5374_s12   ;;  %p5376_p0 = scmp.ne.s32.totalorder %s5375_s29, 0 }
 0x349   : > { %s2858_s11 = scalar_lea.sflag [#allocation5], %s2857_s6 }
 0x34a   : > { %p3292_p5 = pnand %p3300_p11, %p5376_p0 }
 0x34c   : > { %3628 = dma.done.wait (!%p3292_p5), %s2858_s11, 8192  }
 0x34d   : > { %3630 = vsyncadd (!%p3292_p5), %s2858_s11, 4294959104  ;;  %s20_s22 = sadd.s32 1, %s3673_s22   ;;  %s5377_s18 = sld [smem:[#allocation16_spill]] }
 0x34e   : > { %p17_p8 = scmp.ge.s32.totalorder %s20_s22, 6   ;;  %s5378_s20 = sld [smem:[#allocation18_spill]] }
 0x34f   : > { %s5379_s28 = smov %s5393_s15  ;;  %s5380_s12 = smov %s3637_s13 }
 0x350   : > { %s5381_s13 = smov %s3641_s14  ;;  %s5382_s14 = smov %s3891_s2 }
 0x351   : > { %s5383_s15 = smov %s3649_s16  ;;  %s5384_s16 = smov %s3653_s17 }
 0x352   : > { %s5385_s17 = smov %s3886_s10  ;;  %s5386_s19 = smov %s3669_s21 }
 0x353   : > { %s5387_s21 = smov %s5379_s28  ;;  %19 = sbr.rel (!%p17_p8) target bundleno = 13 (0xd), region = 119 }
 0x35a   :  { %2863 = vsyncpa [#allocation4], 1 }
 0x35b   :  { %2865 = vsyncpa [#allocation4 + $0x1], 1 }
 0x35c   :  { %2866 = vsyncpa [#allocation7], 1 }
 0x35d   :  { %2867 = vsyncpa [#allocation5], 1 }
 0x35e   :  { %2869 = vsyncpa [#allocation5 + $0x1], 1 }

</bundles_post_ra>
